<compile_context>
chip_gen: v7x
topology: tpu7x:2x2x1
jax: 0.10.0
libtpu: 0.0.40
codegen_flags: <defaults>
</compile_context>

<pallas_src>
import functools

import jax
import jax.numpy as jnp
from jax import lax
from jax.experimental import pallas as pl
from jax.experimental.pallas import tpu as pltpu


_VMEM_LIMIT = 48 * 1024 * 1024          # scoped VMEM request (fits v5e/v6e/v7x)
_TARGET_BLOCK_BYTES = 2 * 1024 * 1024   # ~2 MiB blocks sit on the HBM-roofline plateau
_A_BYTES_MAX = 4 * 1024 * 1024          # budget for the (L_out, L) averaging matrix
_FLAT_M_BYTES_MAX = 4 * 1024 * 1024     # budget for the (L*C, L_out*C) kron matrix


# ---------------------------------------------------------------------------
# Averaging matrix: folds replicate padding, stride and the 1/K scale.
# ---------------------------------------------------------------------------
def _build_avg_matrix(l, kernel_size, stride, pad, l_out):
    """A[o, t] = #{taps j in [0,K) : clip(o*stride + j - pad, 0, l-1) == t} / K.

    out[b, o, c] = sum_t A[o, t] * x[b, t, c] reproduces AvgPool1d(kernel_size, stride)
    on the replicate-padded series: the pad weights fold into columns 0 / l-1.
    """
    o = jnp.arange(l_out, dtype=jnp.int32)[:, None]      # (l_out, 1)
    t = jnp.arange(l, dtype=jnp.int32)[None, :]          # (1, l)
    lo = o * stride - pad                                # first (unclipped) tap of window o
    hi = lo + kernel_size - 1                            # last  (unclipped) tap of window o
    counts = ((t >= lo) & (t <= hi)).astype(jnp.float32)
    # Replicate padding: out-of-range taps clamp onto t = 0 / t = l - 1.
    extra_front = jnp.clip(-lo[:, 0], 0, kernel_size).astype(jnp.float32)
    extra_back = jnp.clip(hi[:, 0] - (l - 1), 0, kernel_size).astype(jnp.float32)
    counts = counts.at[:, 0].add(extra_front)
    counts = counts.at[:, l - 1].add(extra_back)
    return counts / float(kernel_size)


# ---------------------------------------------------------------------------
# Kernels
# ---------------------------------------------------------------------------
def _avgmat_flat_kernel(m_ref, x_ref, o_ref):
    # x_ref: (bt, L*C) with (time, channel) flattened onto lanes (lane-dense for small C);
    # m_ref: (L*C, L_out*C) = kron(A.T, I_C), resident across grid steps.
    # One MXU matmul per block: padding / stride / 1-over-K live in m, accumulation stays
    # in the MXU f32 accumulators, loads and stores are lane-dense.
    o_ref[...] = jnp.dot(
        x_ref[...], m_ref[...], preferred_element_type=jnp.float32
    ).astype(o_ref.dtype)


def _avgmat_batched_kernel(a_ref, x_ref, o_ref, *, bt):
    # a_ref: (L_out, L); x_ref: (bt, L, ct); o_ref: (bt, L_out, ct).
    # One MXU matmul per batch row — the K-tap reduction runs on the MXU, not the
    # vld/vst/VALU slots, and each output element is stored exactly once.
    a = a_ref[...]
    for i in range(bt):  # static unroll; the wrapper keeps bt small
        o_ref[i, :, :] = jnp.dot(
            a, x_ref[i, :, :], preferred_element_type=jnp.float32
        ).astype(o_ref.dtype)


def _moving_avg_vpu_kernel(x_ref, o_ref, xp_ref, *, kernel_size, stride, pad, l_out,
                           chunk):
    # Long-sequence fallback (the averaging matrix no longer fits VMEM).
    # x_ref: (bt, L, ct); o_ref: (bt, L_out, ct); xp_ref: (bt, L + 2*pad, ct) scratch.
    bt, l, ct = x_ref.shape
    inv_k = 1.0 / kernel_size

    # Replicate-padded series written once into VMEM scratch (no concat temporary); the
    # taps below are plain ref-view loads from it.
    xp_ref[:, pl.ds(pad, l), :] = x_ref[...]
    if pad > 0:
        xp_ref[:, pl.ds(0, pad), :] = jnp.broadcast_to(
            x_ref[:, 0:1, :], (bt, pad, ct))
        xp_ref[:, pl.ds(pad + l, pad), :] = jnp.broadcast_to(
            x_ref[:, l - 1:l, :], (bt, pad, ct))

    def emit_chunk(o0, rows):
        # rows is static; o0 may be a traced chunk offset.  The f32 accumulator is only
        # (bt, rows, ct) — chunk-sized, so it stays ~vreg-resident and each output row is
        # stored exactly once (vs. K read-modify-write passes over a full-block acc).
        acc = jnp.zeros((bt, rows, ct), jnp.float32)
        for w in range(kernel_size):  # static unroll of the K taps
            start = o0 * stride + w
            if stride == 1:
                tap = xp_ref[:, pl.ds(start, rows), :]
            else:
                # TODO(synk): strided sublane reads may lower to rotate/copy chains; if
                # stride > 1 at very long L ever becomes hot, fold the decimation into a
                # halo index_map / manual DMA instead.
                tap = xp_ref[:, pl.ds(start, rows, stride), :]
            acc = acc + tap.astype(jnp.float32)
        o_ref[:, pl.ds(o0, rows), :] = (acc * inv_k).astype(o_ref.dtype)

    n_full = l_out // chunk
    if n_full > 0:
        def body(ci, carry):
            emit_chunk(ci * chunk, chunk)
            return carry
        lax.fori_loop(0, n_full, body, 0)
    rem = l_out - n_full * chunk
    if rem > 0:
        emit_chunk(n_full * chunk, rem)


# ---------------------------------------------------------------------------
# Wrapper
# ---------------------------------------------------------------------------
def _num_tensorcores():
    try:
        dev = jax.devices()[0]
        for attr in ("num_cores", "core_count", "num_tensorcores"):
            v = getattr(dev, attr, None)
            if isinstance(v, int) and v > 0:
                return v
    except Exception:
        pass
    return 1


def _round_block(n, total, align):
    """Clamp a block size to [1, total]; sub-full blocks on the (8,128)-constrained dims
    must be a multiple of `align` (otherwise fall back to the full dim)."""
    n = max(1, min(int(n), int(total)))
    if n < total:
        if total < align:
            return int(total)
        n = min(max(align, (n // align) * align), total)
    return int(n)


def _cparams(n_grid_dims):
    return pltpu.CompilerParams(
        dimension_semantics=("parallel",) * n_grid_dims,
        vmem_limit_bytes=_VMEM_LIMIT,
    )


def moving_avg(x, kernel_size, stride, *, path=None):
    """x: (B, L, C) -> (B, L_out, C); matches the PyTorch moving_avg module."""
    b, l, c = x.shape
    assert kernel_size >= 1 and stride >= 1
    pad = (kernel_size - 1) // 2
    l_pad = l + 2 * pad
    l_out = (l_pad - kernel_size) // stride + 1
    assert l_out >= 1, "sequence too short for this kernel_size / stride"

    itemsize = jnp.dtype(x.dtype).itemsize
    mat_dtype = jnp.float32 if x.dtype == jnp.float32 else x.dtype
    ncores = _num_tensorcores()

    if path is None:
        if c < 128 and (l * c) * (l_out * c) * 4 <= _FLAT_M_BYTES_MAX:
            path = "mxu_flat"      # small-C: lane-densify via the kron averaging matrix
        elif l * l_out * 4 <= _A_BYTES_MAX:
            path = "mxu"           # general case: per-batch-row MXU matmul
        else:
            path = "vpu"           # very long sequences: chunked VPU fallback

    # ---------------- lane-dense small-C MXU path ----------------
    if path == "mxu_flat":
        a = _build_avg_matrix(l, kernel_size, stride, pad, l_out).astype(mat_dtype)
        m = jnp.kron(a.T, jnp.eye(c, dtype=mat_dtype))    # (L*C, L_out*C)
        lc, oc = l * c, l_out * c
        x_flat = x.reshape(b, lc)                          # free: C is innermost
        # Batch tile ~2 MiB; footprint = 2*(in+out) blocks + 2*m + f32 dot temp << 48 MiB.
        bt = min(b, max(1, _TARGET_BLOCK_BYTES // max(1, lc * itemsize)))
        if ncores > 1:
            bt = min(bt, pl.cdiv(b, ncores))
        bt = _round_block(bt, b, 8)          # bt is the sublane dim of the 2-D blocks
        out = pl.pallas_call(
            _avgmat_flat_kernel,
            out_shape=jax.ShapeDtypeStruct((b, oc), x.dtype),
            grid=(pl.cdiv(b, bt),),
            in_specs=[
                pl.BlockSpec((lc, oc), lambda i: (0, 0)),   # resident across steps
                pl.BlockSpec((bt, lc), lambda i: (i, 0)),
            ],
            out_specs=pl.BlockSpec((bt, oc), lambda i: (i, 0)),
            compiler_params=_cparams(1),
        )(m, x_flat)
        return out.reshape(b, l_out, c)

    # ---------------- general per-batch-row MXU path ----------------
    if path == "mxu":
        a = _build_avg_matrix(l, kernel_size, stride, pad, l_out).astype(mat_dtype)
        ct = c if c <= 512 else 512          # full C, or 512-lane (4x128) channel tiles
        in_blk = l * ct * itemsize
        # Footprint: 2*A (<=8 MiB) + 2*(in+out) blocks (<=8 MiB) + f32 dot row temp.
        bt = max(1, min(b, _TARGET_BLOCK_BYTES // max(1, in_blk), 16))
        if ncores > 1 and pl.cdiv(b, bt) * pl.cdiv(c, ct) < ncores:
            bt = max(1, pl.cdiv(b, ncores))
        kernel = functools.partial(_avgmat_batched_kernel, bt=bt)
        return pl.pallas_call(
            kernel,
            out_shape=jax.ShapeDtypeStruct((b, l_out, c), x.dtype),
            grid=(pl.cdiv(b, bt), pl.cdiv(c, ct)),
            in_specs=[
                pl.BlockSpec((l_out, l), lambda i, j: (0, 0)),     # resident
                pl.BlockSpec((bt, l, ct), lambda i, j: (i, 0, j)),
            ],
            out_specs=pl.BlockSpec((bt, l_out, ct), lambda i, j: (i, 0, j)),
            compiler_params=_cparams(2),
        )(a, x)

    # ---------------- long-sequence VPU fallback ----------------
    assert path == "vpu", f"unknown path {path!r}"
    target = 3 * 1024 * 1024
    if l * c * itemsize <= target:
        ct = c
    else:
        ct = max(128, min(c, ((target // (l * itemsize)) // 128) * 128))
    in_blk = l * ct * itemsize
    bt = max(1, min(b, target // max(1, in_blk)))
    # TODO(synk): for extremely long L (L*128*itemsize >> a few MiB) add halo time-axis
    # tiling via manual DMA windows instead of relying on narrow channel tiles alone.
    kernel = functools.partial(
        _moving_avg_vpu_kernel,
        kernel_size=kernel_size, stride=stride, pad=pad, l_out=l_out, chunk=128)
    return pl.pallas_call(
        kernel,
        out_shape=jax.ShapeDtypeStruct((b, l_out, c), x.dtype),
        grid=(pl.cdiv(b, bt), pl.cdiv(c, ct)),
        in_specs=[pl.BlockSpec((bt, l, ct), lambda i, j: (i, 0, j))],
        out_specs=pl.BlockSpec((bt, l_out, ct), lambda i, j: (i, 0, j)),
        scratch_shapes=[pltpu.VMEM((bt, l + 2 * pad, ct), x.dtype)],
        compiler_params=_cparams(2),
    )(x)


# ---------------------------------------------------------------------------
# Pure-JAX reference mirroring the PyTorch module.
# ---------------------------------------------------------------------------
def _moving_avg_ref(x, kernel_size, stride):
    pad = (kernel_size - 1) // 2
    if pad > 0:
        front = jnp.repeat(x[:, 0:1, :], pad, axis=1)
        end = jnp.repeat(x[:, -1:, :], pad, axis=1)
        xpad = jnp.concatenate([front, x, end], axis=1)
    else:
        xpad = x
    l_pad = xpad.shape[1]
    l_out = (l_pad - kernel_size) // stride + 1
    taps = [
        xpad[:, w: w + (l_out - 1) * stride + 1: stride, :].astype(jnp.float32)
        for w in range(kernel_size)
    ]
    return (sum(taps) / kernel_size).astype(x.dtype)


if __name__ == "__main__":
    key = jax.random.PRNGKey(0)
    # (kernel_size, stride, B, L, C, forced_path)
    configs = [
        (25, 1, 4, 96, 7, None),      # classic DLinear decomposition -> lane-dense flat MXU
        (25, 1, 2, 96, 256, None),    # wide channels -> per-batch-row MXU path
        (4, 1, 2, 16, 32, None),      # even kernel_size (L_out = L - 1) -> flat MXU
        (5, 2, 2, 32, 16, None),      # stride > 1 folded into the averaging matrix
        (7, 1, 2, 320, 128, "vpu"),   # force the long-sequence chunked VPU fallback
    ]
    for idx, (ks, st, B, L, C, p) in enumerate(configs):
        k = jax.random.fold_in(key, idx)
        xx = jax.random.normal(k, (B, L, C), dtype=jnp.float32)
        out = jax.block_until_ready(moving_avg(xx, ks, st, path=p))
        ref = _moving_avg_ref(xx, ks, st)
        assert out.shape == ref.shape, (out.shape, ref.shape)
        err = float(jnp.max(jnp.abs(out - ref)))
        # Headroom for worst-case MXU matmul rounding of the f32 contraction; semantic
        # errors (wrong pad / shift / stride) would show up as O(1e-1) discrepancies.
        assert err < 5e-3, (ks, st, B, L, C, p, err)
    print("KERNEL_OK")
</pallas_src>

<mosaic_0001>
module attributes {stable_mosaic.version = 11 : i64} {
  func.func @_avgmat_flat_kernel(%arg0: i32, %arg1: memref<672x672xf32, #tpu.memory_space<vmem>>, %arg2: memref<4x672xf32, #tpu.memory_space<vmem>>, %arg3: memref<4x672xf32, #tpu.memory_space<vmem>>) attributes {dimension_semantics = [#tpu.dimension_semantics<parallel>], iteration_bounds = array<i64: 1>, scalar_prefetch = 0 : i64, scratch_operands = 0 : i64, tpu.core_type = #tpu.core_type<tc>, window_params = [{pipeline_mode = #tpu.pipeline_mode<synchronous>, transform_indices = @transform_0, window_bounds = array<i64: 672, 672>}, {transform_indices = @transform_1, window_bounds = array<i64: 4, 672>}, {transform_indices = @transform_2, window_bounds = array<i64: 4, 672>}]} {
    %c0 = arith.constant 0 : index
    %c0_0 = arith.constant 0 : index
    %0 = vector.load %arg2[%c0, %c0_0] : memref<4x672xf32, #tpu.memory_space<vmem>>, vector<4x672xf32>
    %c0_1 = arith.constant 0 : index
    %c0_2 = arith.constant 0 : index
    %1 = vector.load %arg1[%c0_1, %c0_2] : memref<672x672xf32, #tpu.memory_space<vmem>>, vector<672x672xf32>
    %cst = arith.constant dense<0.000000e+00> : vector<4x672xf32>
    %2 = tpu.matmul %0, %1, %cst {dimension_numbers = #tpu.dot_dimension_numbers<[1], [0], [0], [1], [0, 0, 1, 1], [], []>} : vector<4x672xf32>, vector<672x672xf32>, vector<4x672xf32> -> vector<4x672xf32>
    %c0_3 = arith.constant 0 : index
    %c0_4 = arith.constant 0 : index
    %3 = vector.load %arg3[%c0_3, %c0_4] : memref<4x672xf32, #tpu.memory_space<vmem>>, vector<4x672xf32>
    tpu.vector_store %arg3[%c0_3, %c0_4], %2 {strides = array<i32>} : memref<4x672xf32, #tpu.memory_space<vmem>>, vector<4x672xf32>,
    return
  }
  func.func @transform_0(%arg0: i32) -> (i32, i32) {
    %c0_i32 = arith.constant 0 : i32
    %c0_i32_0 = arith.constant 0 : i32
    %c0_i32_1 = arith.constant 0 : i32
    return %c0_i32, %c0_i32_0 : i32, i32
  }
  func.func @transform_1(%arg0: i32) -> (i32, i32) {
    %c0_i32 = arith.constant 0 : i32
    %c0_i32_0 = arith.constant 0 : i32
    return %arg0, %c0_i32 : i32, i32
  }
  func.func @transform_2(%arg0: i32) -> (i32, i32) {
    %c0_i32 = arith.constant 0 : i32
    %c0_i32_0 = arith.constant 0 : i32
    return %arg0, %c0_i32 : i32, i32
  }
}

</mosaic_0001>

<bundles_post_ra>
// kernel: tpu_custom_call.1
= control target key start
LH: loop header
LB: loop body
LE: loop exit
PB: predicated region body
PF: predicated region fallthrough
CT: control target
= control target key end

     0   :  { %7 = vsyncpa [#allocation3], 0  ;;  %s1929_s0 = inlined_call_operand.hbm [shape: f32[672,672], index: 0, kind: input, shape index: {}]   ;;  %s1930_s1 = inlined_call_operand.hbm [shape: f32[4,672], index: 1, kind: input, shape index: {}]   ;;  %s1931_s2 = inlined_call_operand.hbm [shape: f32[4,672], index: 2, kind: output, shape index: {}]  }
   0x1   :  { %8 = vsyncpa [#allocation6], 0 }
   0x2   :  { %9 = vsyncpa [#allocation4], 0  ;;  %s1831_s9 = smov [#allocation2]   ;;  %s1759_s13 = scalar_lea.hbm %s1929_s0, 64512 }
   0x3   :  { %s15_s10 = sshll.u32 %s1831_s9, 4  ;;  %p1760_p0 = scmp.ne.s32.totalorder %s1929_s0, %s1759_s13  ;;  %s16_s10 = int_to_ptr.vmem [resolvable:$true] %s15_s10 }
   0x4   :  { %p1763_p1 = scmp.lt.u32.totalorder %s1759_s13, %s1929_s0 }
   0x6   :  { %p1765_p2 = pnand %p1763_p1, %p1760_p0 }
   0x8   :  { %1768 = shalt.err (!%p1765_p2)
}
   0x9   :  { %s1769_s18 = scalar_lea.vmem %s16_s10, 64512  ;;  %p1774_p4 = scmp.lt.s32.totalorder %s16_s10, %s16_s10 }
   0xa   :  { %p1770_p3 = scmp.ne.s32.totalorder %s16_s10, %s1769_s18  ;;  %p1775_p5 = scmp.lt.s32.totalorder %s1769_s18, %s1769_s18 }
   0xc   :  { %p1776_p6 = por %p1775_p5, %p1774_p4 }
   0xe   :  { %p1777_p7 = pnand %p1776_p6, %p1770_p3 }
  0x10   :  { %1780 = shalt.err (!%p1777_p7)
}
  0x11   :  { %s1832_s19 = smov 768   ;;  %s1833_s20 = smov 48  }
  0x12   :  { %21 = dma.hbm_to_vmem [thread:$0]  %s1929_s0, 64512, %s16_s10, [#allocation3], %s1832_s19, %s1832_s19, %s1833_s20  }
  0x13   :  { %s1834_s23 = smov [#allocation5]   ;;  %s1781_s27 = scalar_lea.hbm %s1930_s1, 384 }
  0x14   :  { %s28_s24 = sshll.u32 %s1834_s23, 4  ;;  %p1782_p8 = scmp.ne.s32.totalorder %s1930_s1, %s1781_s27  ;;  %s29_s24 = int_to_ptr.vmem [resolvable:$true] %s28_s24 }
  0x15   :  { %p1785_p9 = scmp.lt.u32.totalorder %s1781_s27, %s1930_s1 }
  0x17   :  { %p1787_p10 = pnand %p1785_p9, %p1782_p8 }
  0x19   :  { %1790 = shalt.err (!%p1787_p10)
}
  0x1a   :  { %s1791_s4 = scalar_lea.vmem %s29_s24, 384  ;;  %p1796_p12 = scmp.lt.s32.totalorder %s29_s24, %s29_s24 }
  0x1b   :  { %p1792_p11 = scmp.ne.s32.totalorder %s29_s24, %s1791_s4  ;;  %p1797_p13 = scmp.lt.s32.totalorder %s1791_s4, %s1791_s4 }
  0x1d   :  { %p1798_p0 = por %p1797_p13, %p1796_p12 }
  0x1f   :  { %p1799_p1 = pnand %p1798_p0, %p1792_p11 }
  0x21   :  { %1802 = shalt.err (!%p1799_p1)
}
  0x22   :  { %31 = dma.hbm_to_vmem [thread:$0]  %s1930_s1, 384, %s29_s24, [#allocation6]  }
  0x23   :  { %1825 = dma.done.wait [#allocation3], 64512  }
  0x24   :  { %1826 = vsyncadd [#allocation3], 4294902784 }
  0x25   :  { %1827 = dma.done.wait [#allocation6], 384  }
  0x26   :  { %1828 = vsyncadd [#allocation6], 4294966912  ;;  %v42_v0 = vld [vmem:[#allocation2 + $0x8] sm:$0xff]  ;;  %v48_v1 = vld [vmem:[#allocation2 + $0x38] sm:$0xff]  ;;  %vm553_vm0 = vcmask 261120   ;;  %vm1209_vm1 = vcmask 1043456  }
  0x27   :  { %v234_v2 = vld [vmem:[#allocation2 + $0x608] sm:$0xff]  ;;  %v1232_v3 = vpack.c.bf16 %v48_v1, %v42_v0  ;;  %v240_v4 = vld [vmem:[#allocation2 + $0x638] sm:$0xff]  ;;  %v41_v5 = vld [vmem:[#allocation2] sm:$0xff]  ;;  %vm1210_vm2 = vcmask 261124   ;;  %s1835_s1 = smov [#allocation7]  }
  0x28   :  { %v47_v6 = vld [vmem:[#allocation2 + $0x30] sm:$0xff]  ;;  %v1296_v7 = vpack.c.bf16 %v240_v4, %v234_v2  ;;  %v233_v9 = vld [vmem:[#allocation2 + $0x600] sm:$0xff]  ;;  %v54_v11 = vld [vmem:[#allocation2 + $0x68] sm:$0xff]  ;;  %s1219_s6 = sshll.u32 %s1835_s1, 4  ;;  %s1220_s6 = int_to_ptr.vmem [resolvable:$true] %s1219_s6 }
  0x29   :  { %v1234_v8 = vpack.c.bf16 %v47_v6, %v41_v5  ;;  %v239_v10 = vld [vmem:[#allocation2 + $0x630] sm:$0xff]  ;;  %1233 = vmatprep.subr.bf16.mxu1 %v1232_v3  ;;  %v60_v13 = vld [vmem:[#allocation2 + $0x98] sm:$0xff]  ;;  %v246_v14 = vld [vmem:[#allocation2 + $0x668] sm:$0xff]  ;;  %s1803_s7 = scalar_lea.vmem %s1220_s6, 384  ;;  %p1808_p3 = scmp.lt.s32.totalorder %s1220_s6, %s1220_s6 }
  0x2a   :  { %v1298_v12 = vpack.c.bf16 %v239_v10, %v233_v9  ;;  %v252_v15 = vld [vmem:[#allocation2 + $0x698] sm:$0xff]  ;;  %1297 = vmatprep.subr.bf16.mxu0 %v1296_v7  ;;  %v1236_v16 = vpack.c.bf16 %v60_v13, %v54_v11  ;;  %v53_v18 = vld [vmem:[#allocation2 + $0x60] sm:$0xff]  ;;  %v59_v19 = vld [vmem:[#allocation2 + $0x90] sm:$0xff]  ;;  %p1804_p2 = scmp.ne.s32.totalorder %s1220_s6, %s1803_s7  ;;  %p1809_p4 = scmp.lt.s32.totalorder %s1803_s7, %s1803_s7 }
  0x2b   :  { %1235 = vmatpush1.bf16.msra.mxu1 %v1234_v8  ;;  %v1300_v17 = vpack.c.bf16 %v252_v15, %v246_v14  ;;  %v245_v20 = vld [vmem:[#allocation2 + $0x660] sm:$0xff]  ;;  %v1238_v21 = vpack.c.bf16 %v59_v19, %v53_v18  ;;  %v251_v22 = vld [vmem:[#allocation2 + $0x690] sm:$0xff]  ;;  %v66_v23 = vld [vmem:[#allocation2 + $0xc8] sm:$0xff] }
  0x2c   :  { %1299 = vmatpush1.bf16.msra.mxu0 %v1298_v12  ;;  %v72_v24 = vld [vmem:[#allocation2 + $0xf8] sm:$0xff]  ;;  %1237 = vmatprep.subr.bf16.mxu1 %v1236_v16  ;;  %v1302_v25 = vpack.c.bf16 %v251_v22, %v245_v20  ;;  %v258_v27 = vld [vmem:[#allocation2 + $0x6c8] sm:$0xff]  ;;  %v65_v29 = vld [vmem:[#allocation2 + $0xc0] sm:$0xff]  ;;  %p1810_p5 = por %p1809_p4, %p1808_p3 }
  0x2d   :  { %1301 = vmatprep.subr.bf16.mxu0 %v1300_v17  ;;  %v1240_v26 = vpack.c.bf16 %v72_v24, %v66_v23  ;;  %v264_v28 = vld [vmem:[#allocation2 + $0x6f8] sm:$0xff]  ;;  %v71_v31 = vld [vmem:[#allocation2 + $0xf0] sm:$0xff]  ;;  %v257_v32 = vld [vmem:[#allocation2 + $0x6c0] sm:$0xff] }
  0x2e   :  { %v1304_v30 = vpack.c.bf16 %v264_v28, %v258_v27  ;;  %v263_v33 = vld [vmem:[#allocation2 + $0x6f0] sm:$0xff]  ;;  %v1242_v34 = vpack.c.bf16 %v71_v31, %v65_v29  ;;  %v78_v35 = vld [vmem:[#allocation2 + $0x128] sm:$0xff]  ;;  %v84_v36 = vld [vmem:[#allocation2 + $0x158] sm:$0xff]  ;;  %p1811_p6 = pnand %p1810_p5, %p1804_p2 }
  0x2f   :  { %1239 = vmatpush1.bf16.msra.mxu1 %v1238_v21  ;;  %v270_v37 = vld [vmem:[#allocation2 + $0x728] sm:$0xff]  ;;  %v1306_v38 = vpack.c.bf16 %v263_v33, %v257_v32  ;;  %v1244_v39 = vpack.c.bf16 %v84_v36, %v78_v35  ;;  %v276_v40 = vld [vmem:[#allocation2 + $0x758] sm:$0xff]  ;;  %v77_v41 = vld [vmem:[#allocation2 + $0x120] sm:$0xff] }
  0x30   :  { %1303 = vmatpush1.bf16.msra.mxu0 %v1302_v25  ;;  %1241 = vmatprep.subr.bf16.mxu1 %v1240_v26  ;;  %v83_v42 = vld [vmem:[#allocation2 + $0x150] sm:$0xff]  ;;  %v1308_v43 = vpack.c.bf16 %v276_v40, %v270_v37  ;;  %v269_v44 = vld [vmem:[#allocation2 + $0x720] sm:$0xff]  ;;  %v90_v46 = vld [vmem:[#allocation2 + $0x188] sm:$0xff] }
  0x31   :  { %1305 = vmatprep.subr.bf16.mxu0 %v1304_v30  ;;  %v275_v45 = vld [vmem:[#allocation2 + $0x750] sm:$0xff]  ;;  %v96_v47 = vld [vmem:[#allocation2 + $0x1b8] sm:$0xff]  ;;  %v282_v48 = vld [vmem:[#allocation2 + $0x788] sm:$0xff]  ;;  %v1246_v50 = vpack.c.bf16 %v83_v42, %v77_v41 }
  0x32   :  { %v288_v49 = vld [vmem:[#allocation2 + $0x7b8] sm:$0xff]  ;;  %v1310_v51 = vpack.c.bf16 %v275_v45, %v269_v44  ;;  %v1248_v52 = vpack.c.bf16 %v96_v47, %v90_v46  ;;  %v89_v53 = vld [vmem:[#allocation2 + $0x180] sm:$0xff]  ;;  %v95_v54 = vld [vmem:[#allocation2 + $0x1b0] sm:$0xff] }
  0x33   :  { %1243 = vmatpush1.bf16.msra.mxu1 %v1242_v34  ;;  %v281_v55 = vld [vmem:[#allocation2 + $0x780] sm:$0xff]  ;;  %v1312_v56 = vpack.c.bf16 %v288_v49, %v282_v48  ;;  %v287_v57 = vld [vmem:[#allocation2 + $0x7b0] sm:$0xff]  ;;  %v102_v58 = vld [vmem:[#allocation2 + $0x1e8] sm:$0xff]  ;;  %v1250_v62 = vpack.c.bf16 %v95_v54, %v89_v53 }
  0x34   :  { %1307 = vmatpush1.bf16.msra.mxu0 %v1306_v38  ;;  %1245 = vmatprep.subr.bf16.mxu1 %v1244_v39  ;;  %v108_v59 = vld [vmem:[#allocation2 + $0x218] sm:$0xff]  ;;  %v294_v60 = vld [vmem:[#allocation2 + $0x7e8] sm:$0xff]  ;;  %v1314_v63 = vpack.c.bf16 %v287_v57, %v281_v55  ;;  %v101_v1 = vld [vmem:[#allocation2 + $0x1e0] sm:$0xff] }
  0x35   :  { %1309 = vmatprep.subr.bf16.mxu0 %v1308_v43  ;;  %v300_v61 = vld [vmem:[#allocation2 + $0x818] sm:$0xff]  ;;  %v1252_v0 = vpack.c.bf16 %v108_v59, %v102_v58  ;;  %v107_v2 = vld [vmem:[#allocation2 + $0x210] sm:$0xff]  ;;  %v293_v3 = vld [vmem:[#allocation2 + $0x7e0] sm:$0xff] }
  0x36   :  { %v1316_v4 = vpack.c.bf16 %v300_v61, %v294_v60  ;;  %v299_v5 = vld [vmem:[#allocation2 + $0x810] sm:$0xff]  ;;  %v114_v6 = vld [vmem:[#allocation2 + $0x248] sm:$0xff]  ;;  %v120_v7 = vld [vmem:[#allocation2 + $0x278] sm:$0xff]  ;;  %v1254_v10 = vpack.c.bf16 %v107_v2, %v101_v1 }
  0x37   :  { %1247 = vmatpush1.bf16.msra.mxu1 %v1246_v50  ;;  %v306_v8 = vld [vmem:[#allocation2 + $0x848] sm:$0xff]  ;;  %v312_v9 = vld [vmem:[#allocation2 + $0x878] sm:$0xff]  ;;  %v1318_v11 = vpack.c.bf16 %v299_v5, %v293_v3  ;;  %v1256_v12 = vpack.c.bf16 %v120_v7, %v114_v6  ;;  %v113_v13 = vld [vmem:[#allocation2 + $0x240] sm:$0xff] }
  0x38   :  { %1311 = vmatpush1.bf16.msra.mxu0 %v1310_v51  ;;  %1249 = vmatprep.subr.bf16.mxu1 %v1248_v52  ;;  %v119_v14 = vld [vmem:[#allocation2 + $0x270] sm:$0xff]  ;;  %v305_v15 = vld [vmem:[#allocation2 + $0x840] sm:$0xff]  ;;  %v1320_v16 = vpack.c.bf16 %v312_v9, %v306_v8  ;;  %v126_v18 = vld [vmem:[#allocation2 + $0x2a8] sm:$0xff] }
  0x39   :  { %1313 = vmatprep.subr.bf16.mxu0 %v1312_v56  ;;  %v311_v17 = vld [vmem:[#allocation2 + $0x870] sm:$0xff]  ;;  %v132_v19 = vld [vmem:[#allocation2 + $0x2d8] sm:$0xff]  ;;  %v318_v20 = vld [vmem:[#allocation2 + $0x8a8] sm:$0xff]  ;;  %v1258_v22 = vpack.c.bf16 %v119_v14, %v113_v13 }
  0x3a   :  { %v324_v21 = vld [vmem:[#allocation2 + $0x8d8] sm:$0xff]  ;;  %v1322_v23 = vpack.c.bf16 %v311_v17, %v305_v15  ;;  %v1260_v24 = vpack.c.bf16 %v132_v19, %v126_v18  ;;  %v125_v25 = vld [vmem:[#allocation2 + $0x2a0] sm:$0xff]  ;;  %v131_v26 = vld [vmem:[#allocation2 + $0x2d0] sm:$0xff] }
  0x3b   :  { %1251 = vmatpush1.bf16.msra.mxu1 %v1250_v62  ;;  %v317_v27 = vld [vmem:[#allocation2 + $0x8a0] sm:$0xff]  ;;  %v1324_v28 = vpack.c.bf16 %v324_v21, %v318_v20  ;;  %v323_v29 = vld [vmem:[#allocation2 + $0x8d0] sm:$0xff]  ;;  %v138_v30 = vld [vmem:[#allocation2 + $0x308] sm:$0xff]  ;;  %v1262_v34 = vpack.c.bf16 %v131_v26, %v125_v25 }
  0x3c   :  { %1315 = vmatpush1.bf16.msra.mxu0 %v1314_v63  ;;  %1253 = vmatprep.subr.bf16.mxu1 %v1252_v0  ;;  %v144_v31 = vld [vmem:[#allocation2 + $0x338] sm:$0xff]  ;;  %v330_v32 = vld [vmem:[#allocation2 + $0x908] sm:$0xff]  ;;  %v1326_v35 = vpack.c.bf16 %v323_v29, %v317_v27  ;;  %v137_v37 = vld [vmem:[#allocation2 + $0x300] sm:$0xff] }
  0x3d   :  { %1317 = vmatprep.subr.bf16.mxu0 %v1316_v4  ;;  %v336_v33 = vld [vmem:[#allocation2 + $0x938] sm:$0xff]  ;;  %v1264_v36 = vpack.c.bf16 %v144_v31, %v138_v30  ;;  %v143_v38 = vld [vmem:[#allocation2 + $0x330] sm:$0xff]  ;;  %v329_v39 = vld [vmem:[#allocation2 + $0x900] sm:$0xff] }
  0x3e   :  { %v1328_v40 = vpack.c.bf16 %v336_v33, %v330_v32  ;;  %v335_v41 = vld [vmem:[#allocation2 + $0x930] sm:$0xff]  ;;  %v150_v42 = vld [vmem:[#allocation2 + $0x368] sm:$0xff]  ;;  %v156_v43 = vld [vmem:[#allocation2 + $0x398] sm:$0xff]  ;;  %v1266_v46 = vpack.c.bf16 %v143_v38, %v137_v37 }
  0x3f   :  { %1255 = vmatpush1.bf16.msra.mxu1 %v1254_v10  ;;  %v342_v44 = vld [vmem:[#allocation2 + $0x968] sm:$0xff]  ;;  %v348_v45 = vld [vmem:[#allocation2 + $0x998] sm:$0xff]  ;;  %v1330_v47 = vpack.c.bf16 %v335_v41, %v329_v39  ;;  %v1268_v48 = vpack.c.bf16 %v156_v43, %v150_v42  ;;  %v149_v49 = vld [vmem:[#allocation2 + $0x360] sm:$0xff] }
  0x40   :  { %1319 = vmatpush1.bf16.msra.mxu0 %v1318_v11  ;;  %1257 = vmatprep.subr.bf16.mxu1 %v1256_v12  ;;  %v155_v50 = vld [vmem:[#allocation2 + $0x390] sm:$0xff]  ;;  %v341_v51 = vld [vmem:[#allocation2 + $0x960] sm:$0xff]  ;;  %v1332_v52 = vpack.c.bf16 %v348_v45, %v342_v44  ;;  %v162_v54 = vld [vmem:[#allocation2 + $0x3c8] sm:$0xff] }
  0x41   :  { %1321 = vmatprep.subr.bf16.mxu0 %v1320_v16  ;;  %v347_v53 = vld [vmem:[#allocation2 + $0x990] sm:$0xff]  ;;  %v168_v55 = vld [vmem:[#allocation2 + $0x3f8] sm:$0xff]  ;;  %v354_v56 = vld [vmem:[#allocation2 + $0x9c8] sm:$0xff]  ;;  %v1270_v58 = vpack.c.bf16 %v155_v50, %v149_v49 }
  0x42   :  { %v360_v57 = vld [vmem:[#allocation2 + $0x9f8] sm:$0xff]  ;;  %v1334_v59 = vpack.c.bf16 %v347_v53, %v341_v51  ;;  %v1272_v60 = vpack.c.bf16 %v168_v55, %v162_v54  ;;  %v161_v61 = vld [vmem:[#allocation2 + $0x3c0] sm:$0xff]  ;;  %v167_v62 = vld [vmem:[#allocation2 + $0x3f0] sm:$0xff] }
  0x43   :  { %1259 = vmatpush1.bf16.msra.mxu1 %v1258_v22  ;;  %v353_v63 = vld [vmem:[#allocation2 + $0x9c0] sm:$0xff]  ;;  %v1336_v0 = vpack.c.bf16 %v360_v57, %v354_v56  ;;  %v359_v1 = vld [vmem:[#allocation2 + $0x9f0] sm:$0xff]  ;;  %v174_v2 = vld [vmem:[#allocation2 + $0x428] sm:$0xff]  ;;  %v1274_v6 = vpack.c.bf16 %v167_v62, %v161_v61 }
  0x44   :  { %1323 = vmatpush1.bf16.msra.mxu0 %v1322_v23  ;;  %1261 = vmatprep.subr.bf16.mxu1 %v1260_v24  ;;  %v180_v3 = vld [vmem:[#allocation2 + $0x458] sm:$0xff]  ;;  %v366_v4 = vld [vmem:[#allocation2 + $0xa28] sm:$0xff]  ;;  %v173_v7 = vld [vmem:[#allocation2 + $0x420] sm:$0xff]  ;;  %v1338_v8 = vpack.c.bf16 %v359_v1, %v353_v63 }
  0x45   :  { %1325 = vmatprep.subr.bf16.mxu0 %v1324_v28  ;;  %v372_v5 = vld [vmem:[#allocation2 + $0xa58] sm:$0xff]  ;;  %v1276_v9 = vpack.c.bf16 %v180_v3, %v174_v2  ;;  %v179_v10 = vld [vmem:[#allocation2 + $0x450] sm:$0xff]  ;;  %v365_v11 = vld [vmem:[#allocation2 + $0xa20] sm:$0xff] }
  0x46   :  { %v371_v12 = vld [vmem:[#allocation2 + $0xa50] sm:$0xff]  ;;  %v1340_v13 = vpack.c.bf16 %v372_v5, %v366_v4  ;;  %v186_v14 = vld [vmem:[#allocation2 + $0x488] sm:$0xff]  ;;  %v192_v15 = vld [vmem:[#allocation2 + $0x4b8] sm:$0xff]  ;;  %v1278_v21 = vpack.c.bf16 %v179_v10, %v173_v7 }
  0x47   :  { %1263 = vmatpush1.bf16.msra.mxu1 %v1262_v34  ;;  %v1875_v16 = vld [vmem:[#allocation5] sm:$0xff]  ;;  %v378_v17 = vld [vmem:[#allocation2 + $0xa88] sm:$0xff]  ;;  %v384_v18 = vld [vmem:[#allocation2 + $0xab8] sm:$0xff]  ;;  %v1342_v23 = vpack.c.bf16 %v371_v12, %v365_v11  ;;  %v1280_v24 = vpack.c.bf16 %v192_v15, %v186_v14 }
  0x48   :  { %1327 = vmatpush1.bf16.msra.mxu0 %v1326_v35  ;;  %1265 = vmatprep.subr.bf16.mxu1 %v1264_v36  ;;  %v1879_v19 = vcombine.high %v1875_v16, %v1875_v16  ;;  %v1881_v20 = vld [vmem:[#allocation5 + $0x8] sm:$0xff]  ;;  %v185_v25 = vld [vmem:[#allocation2 + $0x480] sm:$0xff]  ;;  %v191_v26 = vld [vmem:[#allocation2 + $0x4b0] sm:$0xff]  ;;  %v1344_v28 = vpack.c.bf16 %v384_v18, %v378_v17 }
  0x49   :  { %1329 = vmatprep.subr.bf16.mxu0 %v1328_v40  ;;  %v1885_v22 = vcombine.high %v1881_v20, %v1881_v20  ;;  %v377_v27 = vld [vmem:[#allocation2 + $0xa80] sm:$0xff]  ;;  %v383_v29 = vld [vmem:[#allocation2 + $0xab0] sm:$0xff]  ;;  %v198_v30 = vld [vmem:[#allocation2 + $0x4e8] sm:$0xff]  ;;  %v1282_v34 = vpack.c.bf16 %v191_v26, %v185_v25 }
  0x4a   :  { %v204_v31 = vld [vmem:[#allocation2 + $0x518] sm:$0xff]  ;;  %620 = vmatprep.mubr.f32.mxu1 %v1879_v19  ;;  %v390_v32 = vld [vmem:[#allocation2 + $0xae8] sm:$0xff]  ;;  %v1346_v35 = vpack.c.bf16 %v383_v29, %v377_v27  ;;  %v197_v37 = vld [vmem:[#allocation2 + $0x4e0] sm:$0xff] }
  0x4b   :  { %1267 = vmatpush1.bf16.msra.mxu1 %v1266_v46  ;;  %v396_v33 = vld [vmem:[#allocation2 + $0xb18] sm:$0xff]  ;;  %691 = vmatprep.mubr.f32.mxu0 %v1885_v22  ;;  %v1284_v36 = vpack.c.bf16 %v204_v31, %v198_v30  ;;  %v203_v38 = vld [vmem:[#allocation2 + $0x510] sm:$0xff]  ;;  %v389_v39 = vld [vmem:[#allocation2 + $0xae0] sm:$0xff] }
  0x4c   :  { %1331 = vmatpush1.bf16.msra.mxu0 %v1330_v47  ;;  %1269 = vmatprep.subr.bf16.mxu1 %v1268_v48  ;;  %v1348_v40 = vpack.c.bf16 %v396_v33, %v390_v32  ;;  %v395_v41 = vld [vmem:[#allocation2 + $0xb10] sm:$0xff]  ;;  %v210_v42 = vld [vmem:[#allocation2 + $0x548] sm:$0xff]  ;;  %v216_v43 = vld [vmem:[#allocation2 + $0x578] sm:$0xff]  ;;  %v1286_v46 = vpack.c.bf16 %v203_v38, %v197_v37 }
  0x4d   :  { %1333 = vmatprep.subr.bf16.mxu0 %v1332_v52  ;;  %v402_v44 = vld [vmem:[#allocation2 + $0xb48] sm:$0xff]  ;;  %v408_v45 = vld [vmem:[#allocation2 + $0xb78] sm:$0xff]  ;;  %v1350_v47 = vpack.c.bf16 %v395_v41, %v389_v39  ;;  %v1288_v48 = vpack.c.bf16 %v216_v43, %v210_v42  ;;  %v209_v49 = vld [vmem:[#allocation2 + $0x540] sm:$0xff] }
  0x4e   :  { %v215_v50 = vld [vmem:[#allocation2 + $0x570] sm:$0xff]  ;;  %v401_v51 = vld [vmem:[#allocation2 + $0xb40] sm:$0xff]  ;;  %v1352_v52 = vpack.c.bf16 %v408_v45, %v402_v44  ;;  %v222_v54 = vld [vmem:[#allocation2 + $0x5a8] sm:$0xff] }
  0x4f   :  { %1271 = vmatpush1.bf16.msra.mxu1 %v1270_v58  ;;  %v407_v53 = vld [vmem:[#allocation2 + $0xb70] sm:$0xff]  ;;  %v228_v55 = vld [vmem:[#allocation2 + $0x5d8] sm:$0xff]  ;;  %v414_v56 = vld [vmem:[#allocation2 + $0xba8] sm:$0xff]  ;;  %v1290_v58 = vpack.c.bf16 %v215_v50, %v209_v49 }
  0x50   :  { %1335 = vmatpush1.bf16.msra.mxu0 %v1334_v59  ;;  %1273 = vmatprep.subr.bf16.mxu1 %v1272_v60  ;;  %v420_v57 = vld [vmem:[#allocation2 + $0xbd8] sm:$0xff]  ;;  %v1354_v59 = vpack.c.bf16 %v407_v53, %v401_v51  ;;  %v1292_v60 = vpack.c.bf16 %v228_v55, %v222_v54  ;;  %v221_v61 = vld [vmem:[#allocation2 + $0x5a0] sm:$0xff]  ;;  %v227_v62 = vld [vmem:[#allocation2 + $0x5d0] sm:$0xff] }
  0x51   :  { %1337 = vmatprep.subr.bf16.mxu0 %v1336_v0  ;;  %v413_v63 = vld [vmem:[#allocation2 + $0xba0] sm:$0xff]  ;;  %v1356_v0 = vpack.c.bf16 %v420_v57, %v414_v56  ;;  %v419_v1 = vld [vmem:[#allocation2 + $0xbd0] sm:$0xff]  ;;  %v44_v2 = vld [vmem:[#allocation2 + $0x18] sm:$0xff] }
  0x52   :  { %v50_v3 = vld [vmem:[#allocation2 + $0x48] sm:$0xff]  ;;  %v432_v5 = vld [vmem:[#allocation2 + $0xc38] sm:$0xff]  ;;  %v1358_v7 = vpack.c.bf16 %v419_v1, %v413_v63  ;;  %v43_v10 = vld [vmem:[#allocation2 + $0x10] sm:$0xff] }
  0x53   :  { %1275 = vmatpush1.bf16.msra.mxu1 %v1274_v6  ;;  %v426_v4 = vld [vmem:[#allocation2 + $0xc08] sm:$0xff]  ;;  %v1294_v6 = vpack.c.bf16 %v227_v62, %v221_v61  ;;  %v49_v11 = vld [vmem:[#allocation2 + $0x40] sm:$0xff]  ;;  %v56_v14 = vld [vmem:[#allocation2 + $0x78] sm:$0xff] }
  0x54   :  { %1339 = vmatpush1.bf16.msra.mxu0 %v1338_v8  ;;  %1277 = vmatprep.subr.bf16.mxu1 %v1276_v9  ;;  %v1400_v8 = vpack.c.bf16 %v50_v3, %v44_v2  ;;  %v425_v9 = vld [vmem:[#allocation2 + $0xc00] sm:$0xff]  ;;  %v1360_v12 = vpack.c.bf16 %v432_v5, %v426_v4  ;;  %v62_v15 = vld [vmem:[#allocation2 + $0xa8] sm:$0xff]  ;;  %v444_v18 = vld [vmem:[#allocation2 + $0xc98] sm:$0xff] }
  0x55   :  { %1341 = vmatprep.subr.bf16.mxu0 %v1340_v13  ;;  %v431_v13 = vld [vmem:[#allocation2 + $0xc30] sm:$0xff]  ;;  %v438_v17 = vld [vmem:[#allocation2 + $0xc68] sm:$0xff]  ;;  %v437_v25 = vld [vmem:[#allocation2 + $0xc60] sm:$0xff] }
  0x56   :  { %v55_v26 = vld [vmem:[#allocation2 + $0x70] sm:$0xff]  ;;  %v61_v27 = vld [vmem:[#allocation2 + $0xa0] sm:$0xff]  ;;  %v68_v30 = vld [vmem:[#allocation2 + $0xd8] sm:$0xff] }
  0x57   :  { %1279 = vmatpush1.bf16.msra.mxu1 %v1278_v21  ;;  %v1402_v21 = vpack.c.bf16 %v49_v11, %v43_v10  ;;  %v443_v29 = vld [vmem:[#allocation2 + $0xc90] sm:$0xff]  ;;  %v74_v31 = vld [vmem:[#allocation2 + $0x108] sm:$0xff]  ;;  %v456_v33 = vld [vmem:[#allocation2 + $0xcf8] sm:$0xff] }
  0x58   :  { %1343 = vmatpush1.bf16.msra.mxu0 %v1342_v23  ;;  %1281 = vmatprep.subr.bf16.mxu1 %v1280_v24  ;;  %v1362_v23 = vpack.c.bf16 %v431_v13, %v425_v9  ;;  %v1404_v24 = vpack.c.bf16 %v62_v15, %v56_v14  ;;  %v450_v32 = vld [vmem:[#allocation2 + $0xcc8] sm:$0xff]  ;;  %v1408_v37 = vpack.c.bf16 %v74_v31, %v68_v30  ;;  %v455_v38 = vld [vmem:[#allocation2 + $0xcf0] sm:$0xff]  ;;  %v80_v42 = vld [vmem:[#allocation2 + $0x138] sm:$0xff] }
  0x59   :  { %1345 = vmatprep.subr.bf16.mxu0 %v1344_v28  ;;  %v1364_v28 = vpack.c.bf16 %v444_v18, %v438_v17  ;;  %v67_v39 = vld [vmem:[#allocation2 + $0xd0] sm:$0xff]  ;;  %v1368_v41 = vpack.c.bf16 %v456_v33, %v450_v32  ;;  %v86_v43 = vld [vmem:[#allocation2 + $0x168] sm:$0xff]  ;;  %v461_v50 = vld [vmem:[#allocation2 + $0xd20] sm:$0xff] }
  0x5a   :  { %v1891_v44 = vld [vmem:[#allocation5 + $0x10] sm:$0xff]  ;;  %v462_v45 = vld [vmem:[#allocation2 + $0xd28] sm:$0xff]  ;;  %v1412_v49 = vpack.c.bf16 %v86_v43, %v80_v42  ;;  %v92_v55 = vld [vmem:[#allocation2 + $0x198] sm:$0xff] }
  0x5b   :  { %1283 = vmatpush1.bf16.msra.mxu1 %v1282_v34  ;;  %v1406_v34 = vpack.c.bf16 %v61_v27, %v55_v26  ;;  %v79_v51 = vld [vmem:[#allocation2 + $0x130] sm:$0xff]  ;;  %v98_v56 = vld [vmem:[#allocation2 + $0x1c8] sm:$0xff]  ;;  %v473_v62 = vld [vmem:[#allocation2 + $0xd80] sm:$0xff] }
  0x5c   :  { %1347 = vmatpush1.bf16.msra.mxu0 %v1346_v35  ;;  %1285 = vmatprep.subr.bf16.mxu1 %v1284_v36  ;;  %v449_v35 = vld [vmem:[#allocation2 + $0xcc0] sm:$0xff]  ;;  %v1366_v36 = vpack.c.bf16 %v443_v29, %v437_v25  ;;  %v467_v54 = vld [vmem:[#allocation2 + $0xd50] sm:$0xff]  ;;  %v474_v57 = vld [vmem:[#allocation2 + $0xd88] sm:$0xff]  ;;  %v1416_v61 = vpack.c.bf16 %v98_v56, %v92_v55 }
  0x5d   :  { %1349 = vmatprep.subr.bf16.mxu0 %v1348_v40  ;;  %v73_v40 = vld [vmem:[#allocation2 + $0x100] sm:$0xff]  ;;  %v91_v63 = vld [vmem:[#allocation2 + $0x190] sm:$0xff]  ;;  %v104_v3 = vld [vmem:[#allocation2 + $0x1f8] sm:$0xff] }
  0x5e   :  { %v479_v2 = vld [vmem:[#allocation2 + $0xdb0] sm:$0xff]  ;;  %v110_v4 = vld [vmem:[#allocation2 + $0x228] sm:$0xff]  ;;  %v485_v10 = vld [vmem:[#allocation2 + $0xde0] sm:$0xff] }
  0x5f   :  { %1287 = vmatpush1.bf16.msra.mxu1 %v1286_v46  ;;  %v1896_v46 = vcombine.high %v1891_v44, %v1891_v44  ;;  %v486_v5 = vld [vmem:[#allocation2 + $0xde8] sm:$0xff]  ;;  %v1420_v9 = vpack.c.bf16 %v110_v4, %v104_v3  ;;  %v103_v11 = vld [vmem:[#allocation2 + $0x1f0] sm:$0xff]  ;;  %v116_v15 = vld [vmem:[#allocation2 + $0x258] sm:$0xff] }
  0x60   :  { %1351 = vmatpush1.bf16.msra.mxu0 %v1350_v47  ;;  %1289 = vmatprep.subr.bf16.mxu1 %v1288_v48  ;;  %v1410_v47 = vpack.c.bf16 %v73_v40, %v67_v39  ;;  %v1370_v48 = vpack.c.bf16 %v455_v38, %v449_v35  ;;  %v491_v14 = vld [vmem:[#allocation2 + $0xe10] sm:$0xff]  ;;  %v122_v17 = vld [vmem:[#allocation2 + $0x288] sm:$0xff]  ;;  %v497_v26 = vld [vmem:[#allocation2 + $0xe40] sm:$0xff] }
  0x61   :  { %1353 = vmatprep.subr.bf16.mxu0 %v1352_v52  ;;  %v85_v52 = vld [vmem:[#allocation2 + $0x160] sm:$0xff]  ;;  %v498_v18 = vld [vmem:[#allocation2 + $0xe48] sm:$0xff]  ;;  %v1424_v25 = vpack.c.bf16 %v122_v17, %v116_v15  ;;  %v115_v27 = vld [vmem:[#allocation2 + $0x250] sm:$0xff] }
  0x62   :  { %v503_v30 = vld [vmem:[#allocation2 + $0xe70] sm:$0xff]  ;;  %v128_v31 = vld [vmem:[#allocation2 + $0x2b8] sm:$0xff]  ;;  %v134_v32 = vld [vmem:[#allocation2 + $0x2e8] sm:$0xff] }
  0x63   :  { %1291 = vmatpush1.bf16.msra.mxu1 %v1290_v58  ;;  %v480_v58 = vld [vmem:[#allocation2 + $0xdb8] sm:$0xff]  ;;  %v510_v33 = vld [vmem:[#allocation2 + $0xea8] sm:$0xff]  ;;  %v509_v38 = vld [vmem:[#allocation2 + $0xea0] sm:$0xff] }
  0x64   :  { %1355 = vmatpush1.bf16.msra.mxu0 %v1354_v59  ;;  %1293 = vmatprep.subr.bf16.mxu1 %v1292_v60  ;;  %v1414_v59 = vpack.c.bf16 %v85_v52, %v79_v51  ;;  %v1374_v60 = vpack.c.bf16 %v467_v54, %v461_v50  ;;  %v1376_v1 = vpack.c.bf16 %v480_v58, %v474_v57  ;;  %v127_v39 = vld [vmem:[#allocation2 + $0x2b0] sm:$0xff]  ;;  %v133_v40 = vld [vmem:[#allocation2 + $0x2e0] sm:$0xff]  ;;  %v140_v43 = vld [vmem:[#allocation2 + $0x318] sm:$0xff] }
  0x65   :  { %1357 = vmatprep.subr.bf16.mxu0 %v1356_v0  ;;  %v97_v0 = vld [vmem:[#allocation2 + $0x1c0] sm:$0xff]  ;;  %v515_v42 = vld [vmem:[#allocation2 + $0xed0] sm:$0xff]  ;;  %v152_v56 = vld [vmem:[#allocation2 + $0x378] sm:$0xff] }
  0x66   :  { %v521_v51 = vld [vmem:[#allocation2 + $0xf00] sm:$0xff]  ;;  %v139_v52 = vld [vmem:[#allocation2 + $0x310] sm:$0xff]  ;;  %v158_v57 = vld [vmem:[#allocation2 + $0x3a8] sm:$0xff] }
  0x67   :  { %1295 = vmatpush1.bf16.msra.mxu1 %v1294_v6  ;;  %v492_v6 = vld [vmem:[#allocation2 + $0xe18] sm:$0xff]  ;;  %v527_v55 = vld [vmem:[#allocation2 + $0xf30] sm:$0xff]  ;;  %v534_v58 = vld [vmem:[#allocation2 + $0xf68] sm:$0xff] }
  0x68   :  { %1359 = vmatpush1.bf16.msra.mxu0 %v1358_v7  ;;  %1401 = vmatprep.subr.bf16.mxu1 %v1400_v8  ;;  %v1418_v7 = vpack.c.bf16 %v97_v0, %v91_v63  ;;  %v1378_v8 = vpack.c.bf16 %v479_v2, %v473_v62  ;;  %v1380_v13 = vpack.c.bf16 %v492_v6, %v486_v5  ;;  %v533_v63 = vld [vmem:[#allocation2 + $0xf60] sm:$0xff]  ;;  %v151_v0 = vld [vmem:[#allocation2 + $0x370] sm:$0xff]  ;;  %v164_v4 = vld [vmem:[#allocation2 + $0x3d8] sm:$0xff] }
  0x69   :  { %1361 = vmatprep.subr.bf16.mxu0 %v1360_v12  ;;  %v109_v12 = vld [vmem:[#allocation2 + $0x220] sm:$0xff]  ;;  %v1436_v62 = vpack.c.bf16 %v158_v57, %v152_v56  ;;  %v539_v3 = vld [vmem:[#allocation2 + $0xf90] sm:$0xff]  ;;  %v170_v5 = vld [vmem:[#allocation2 + $0x408] sm:$0xff] }
  0x6a   :  { %621 = vmatmul.mubr.f32.vlgmr.msra.gmra.mrb[0].mxu1 %v1875_v16  ;;  %v46_v6 = vld [vmem:[#allocation2 + $0x28] sm:$0xff]  ;;  %v51_v15 = vld [vmem:[#allocation2 + $0x50] sm:$0xff]  ;;  %v176_v17 = vld [vmem:[#allocation2 + $0x438] sm:$0xff] }
  0x6b   :  { %692 = vmatmul.mubr.f32.vlgmr.msra.gmra.mrb[0].mxu0 %v1881_v20  ;;  %1403 = vmatpush1.bf16.msra.mxu1 %v1402_v21  ;;  %v468_v20 = vld [vmem:[#allocation2 + $0xd58] sm:$0xff]  ;;  %v218_v57 = vld [vmem:[#allocation2 + $0x588] sm:$0xff]  ;;  %vm1211_vm3 = vmor %vm1210_vm2, %vm1209_vm1 }
  0x6c   :  { %1363 = vmatpush1.bf16.msra.mxu0 %v1362_v23  ;;  %1405 = vmatprep.subr.bf16.mxu1 %v1404_v24  ;;  %v1372_v53 = vpack.c.bf16 %v468_v20, %v462_v45  ;;  %v504_v21 = vld [vmem:[#allocation2 + $0xe78] sm:$0xff]  ;;  %v1422_v23 = vpack.c.bf16 %v109_v12, %v103_v11  ;;  %v1382_v24 = vpack.c.bf16 %v491_v14, %v485_v10  ;;  %v146_v45 = vld [vmem:[#allocation2 + $0x348] sm:$0xff]  ;;  %v163_v11 = vld [vmem:[#allocation2 + $0x3d0] sm:$0xff] }
  0x6d   :  { %1365 = vmatprep.subr.bf16.mxu0 %v1364_v28  ;;  %833 = vmatprep.mubr.f32.mxu1 %v1879_v19  ;;  %v121_v28 = vld [vmem:[#allocation2 + $0x280] sm:$0xff]  ;;  %v1384_v29 = vpack.c.bf16 %v504_v21, %v498_v18  ;;  %v522_v20 = vld [vmem:[#allocation2 + $0xf08] sm:$0xff]  ;;  %v1432_v50 = vpack.c.bf16 %v146_v45, %v140_v43  ;;  %v1440_v10 = vpack.c.bf16 %v170_v5, %v164_v4  ;;  %v75_v43 = vld [vmem:[#allocation2 + $0x110] sm:$0xff] }
  0x6e   :  { %1229 = vmatprep.mubr.msk.f32.mxu0 %vm553_vm0, %v1896_v46  ;;  %v1426_v35 = vpack.c.bf16 %v121_v28, %v115_v27  ;;  %v169_v12 = vld [vmem:[#allocation2 + $0x400] sm:$0xff]  ;;  %v182_v18 = vld [vmem:[#allocation2 + $0x468] sm:$0xff]  ;;  %v175_v27 = vld [vmem:[#allocation2 + $0x430] sm:$0xff] }
  0x6f   :  { %1407 = vmatpush1.bf16.msra.mxu1 %v1406_v34  ;;  %v516_v34 = vld [vmem:[#allocation2 + $0xed8] sm:$0xff]  ;;  %v58_v21 = vld [vmem:[#allocation2 + $0x88] sm:$0xff]  ;;  %v181_v28 = vld [vmem:[#allocation2 + $0x460] sm:$0xff] }
  0x70   :  { %1367 = vmatpush1.bf16.msra.mxu0 %v1366_v36  ;;  %1409 = vmatprep.subr.bf16.mxu1 %v1408_v37  ;;  %v1386_v36 = vpack.c.bf16 %v503_v30, %v497_v26  ;;  %v1428_v37 = vpack.c.bf16 %v134_v32, %v128_v31  ;;  %v1444_v26 = vpack.c.bf16 %v182_v18, %v176_v17  ;;  %v63_v31 = vld [vmem:[#allocation2 + $0xb0] sm:$0xff]  ;;  %v188_v32 = vld [vmem:[#allocation2 + $0x498] sm:$0xff]  ;;  %v230_v4 = vld [vmem:[#allocation2 + $0x5e8] sm:$0xff] }
  0x71   :  { %1369 = vmatprep.subr.bf16.mxu0 %v1368_v41  ;;  %v1388_v41 = vpack.c.bf16 %v516_v34, %v510_v33  ;;  %v194_v33 = vld [vmem:[#allocation2 + $0x4c8] sm:$0xff]  ;;  %v200_v45 = vld [vmem:[#allocation2 + $0x4f8] sm:$0xff] }
  0x72   :  { %v70_v34 = vld [vmem:[#allocation2 + $0xe8] sm:$0xff]  ;;  %v212_v56 = vld [vmem:[#allocation2 + $0x558] sm:$0xff] }
  0x73   :  { %1411 = vmatpush1.bf16.msra.mxu1 %v1410_v47  ;;  %v528_v47 = vld [vmem:[#allocation2 + $0xf38] sm:$0xff]  ;;  %v106_v5 = vld [vmem:[#allocation2 + $0x208] sm:$0xff] }
  0x74   :  { %1371 = vmatpush1.bf16.msra.mxu0 %v1370_v48  ;;  %1413 = vmatprep.subr.bf16.mxu1 %v1412_v49  ;;  %v1430_v48 = vpack.c.bf16 %v133_v40, %v127_v39  ;;  %v1390_v49 = vpack.c.bf16 %v515_v42, %v509_v38  ;;  %v1392_v54 = vpack.c.bf16 %v528_v47, %v522_v20  ;;  %v187_v39 = vld [vmem:[#allocation2 + $0x490] sm:$0xff]  ;;  %v193_v40 = vld [vmem:[#allocation2 + $0x4c0] sm:$0xff]  ;;  %v206_v20 = vld [vmem:[#allocation2 + $0x528] sm:$0xff] }
  0x75   :  { %1373 = vmatprep.subr.bf16.mxu0 %v1372_v53  ;;  %v145_v53 = vld [vmem:[#allocation2 + $0x340] sm:$0xff]  ;;  %v1448_v38 = vpack.c.bf16 %v194_v33, %v188_v32  ;;  %v82_v47 = vld [vmem:[#allocation2 + $0x148] sm:$0xff] }
  0x76   :  { %v242_v17 = vld [vmem:[#allocation2 + $0x648] sm:$0xff] }
  0x77   :  { %1415 = vmatpush1.bf16.msra.mxu1 %v1414_v59  ;;  %v540_v59 = vld [vmem:[#allocation2 + $0xf98] sm:$0xff]  ;;  %v118_v18 = vld [vmem:[#allocation2 + $0x268] sm:$0xff] }
  0x78   :  { %1375 = vmatpush1.bf16.msra.mxu0 %v1374_v60  ;;  %1417 = vmatprep.subr.bf16.mxu1 %v1416_v61  ;;  %v1434_v60 = vpack.c.bf16 %v145_v53, %v139_v52  ;;  %v1394_v61 = vpack.c.bf16 %v527_v55, %v521_v51  ;;  %v1396_v2 = vpack.c.bf16 %v540_v59, %v534_v58  ;;  %v199_v51 = vld [vmem:[#allocation2 + $0x4f0] sm:$0xff]  ;;  %v205_v52 = vld [vmem:[#allocation2 + $0x520] sm:$0xff]  ;;  %v94_v58 = vld [vmem:[#allocation2 + $0x1a8] sm:$0xff] }
  0x79   :  { %1377 = vmatprep.subr.bf16.mxu0 %v1376_v1  ;;  %v157_v1 = vld [vmem:[#allocation2 + $0x3a0] sm:$0xff]  ;;  %v87_v55 = vld [vmem:[#allocation2 + $0x170] sm:$0xff]  ;;  %v100_v59 = vld [vmem:[#allocation2 + $0x1d8] sm:$0xff] }
  0x7a   :  { %v81_v53 = vld [vmem:[#allocation2 + $0x140] sm:$0xff]  ;;  %v254_v32 = vld [vmem:[#allocation2 + $0x6a8] sm:$0xff] }
  0x7b   :  { %1419 = vmatpush1.bf16.msra.mxu1 %v1418_v7  ;;  %v52_v7 = vld [vmem:[#allocation2 + $0x58] sm:$0xff]  ;;  %v130_v33 = vld [vmem:[#allocation2 + $0x2c8] sm:$0xff] }
  0x7c   :  { %1379 = vmatpush1.bf16.msra.mxu0 %v1378_v8  ;;  %1421 = vmatprep.subr.bf16.mxu1 %v1420_v9  ;;  %v1438_v8 = vpack.c.bf16 %v157_v1, %v151_v0  ;;  %v1398_v9 = vpack.c.bf16 %v539_v3, %v533_v63  ;;  %v1568_v14 = vpack.c.bf16 %v52_v7, %v46_v6  ;;  %v217_v63 = vld [vmem:[#allocation2 + $0x580] sm:$0xff]  ;;  %v224_v3 = vld [vmem:[#allocation2 + $0x5b8] sm:$0xff] }
  0x7d   :  { %1381 = vmatprep.subr.bf16.mxu0 %v1380_v13  ;;  %v45_v13 = vld [vmem:[#allocation2 + $0x20] sm:$0xff]  ;;  %v1584_v1 = vpack.c.bf16 %v100_v59, %v94_v58  ;;  %v112_v6 = vld [vmem:[#allocation2 + $0x238] sm:$0xff] }
  0x7e   :  { %v93_v0 = vld [vmem:[#allocation2 + $0x1a0] sm:$0xff] }
  0x7f   :  { %1423 = vmatpush1.bf16.msra.mxu1 %v1422_v23  ;;  %v64_v23 = vld [vmem:[#allocation2 + $0xb8] sm:$0xff] }
  0x80   :  { %1383 = vmatpush1.bf16.msra.mxu0 %v1382_v24  ;;  %1425 = vmatprep.subr.bf16.mxu1 %v1424_v25  ;;  %v1442_v24 = vpack.c.bf16 %v169_v12, %v163_v11  ;;  %v1570_v25 = vpack.c.bf16 %v51_v15, %v45_v13  ;;  %v1572_v30 = vpack.c.bf16 %v64_v23, %v58_v21  ;;  %v229_v11 = vld [vmem:[#allocation2 + $0x5e0] sm:$0xff]  ;;  %v236_v15 = vld [vmem:[#allocation2 + $0x618] sm:$0xff] }
  0x81   :  { %1385 = vmatprep.subr.bf16.mxu0 %v1384_v29  ;;  %v57_v29 = vld [vmem:[#allocation2 + $0x80] sm:$0xff]  ;;  %v1588_v13 = vpack.c.bf16 %v112_v6, %v106_v5  ;;  %v124_v21 = vld [vmem:[#allocation2 + $0x298] sm:$0xff] }
  0x82   :  { %v105_v12 = vld [vmem:[#allocation2 + $0x200] sm:$0xff] }
  0x83   :  { %1427 = vmatpush1.bf16.msra.mxu1 %v1426_v35  ;;  %v76_v35 = vld [vmem:[#allocation2 + $0x118] sm:$0xff] }
  0x84   :  { %1387 = vmatpush1.bf16.msra.mxu0 %v1386_v36  ;;  %1429 = vmatprep.subr.bf16.mxu1 %v1428_v37  ;;  %v1446_v36 = vpack.c.bf16 %v181_v28, %v175_v27  ;;  %v1574_v37 = vpack.c.bf16 %v63_v31, %v57_v29  ;;  %v1576_v42 = vpack.c.bf16 %v76_v35, %v70_v34  ;;  %v241_v27 = vld [vmem:[#allocation2 + $0x640] sm:$0xff]  ;;  %v248_v31 = vld [vmem:[#allocation2 + $0x678] sm:$0xff] }
  0x85   :  { %1389 = vmatprep.subr.bf16.mxu0 %v1388_v41  ;;  %v69_v41 = vld [vmem:[#allocation2 + $0xe0] sm:$0xff]  ;;  %v1592_v29 = vpack.c.bf16 %v124_v21, %v118_v18  ;;  %v136_v34 = vld [vmem:[#allocation2 + $0x2f8] sm:$0xff] }
  0x86   :  { %v117_v28 = vld [vmem:[#allocation2 + $0x260] sm:$0xff] }
  0x87   :  { %1431 = vmatpush1.bf16.msra.mxu1 %v1430_v48  ;;  %v88_v48 = vld [vmem:[#allocation2 + $0x178] sm:$0xff] }
  0x88   :  { %1391 = vmatpush1.bf16.msra.mxu0 %v1390_v49  ;;  %1433 = vmatprep.subr.bf16.mxu1 %v1432_v50  ;;  %v1578_v49 = vpack.c.bf16 %v75_v43, %v69_v41  ;;  %v1452_v50 = vpack.c.bf16 %v206_v20, %v200_v45  ;;  %v1596_v41 = vpack.c.bf16 %v136_v34, %v130_v33  ;;  %v260_v43 = vld [vmem:[#allocation2 + $0x6d8] sm:$0xff]  ;;  %v266_v45 = vld [vmem:[#allocation2 + $0x708] sm:$0xff] }
  0x89   :  { %1393 = vmatprep.subr.bf16.mxu0 %v1392_v54  ;;  %v1580_v54 = vpack.c.bf16 %v88_v48, %v82_v47  ;;  %v142_v20 = vld [vmem:[#allocation2 + $0x328] sm:$0xff]  ;;  %v148_v47 = vld [vmem:[#allocation2 + $0x358] sm:$0xff] }
  0x8b   :  { %1435 = vmatpush1.bf16.msra.mxu1 %v1434_v60  ;;  %v1582_v60 = vpack.c.bf16 %v87_v55, %v81_v53  ;;  %v1600_v53 = vpack.c.bf16 %v148_v47, %v142_v20  ;;  %v272_v55 = vld [vmem:[#allocation2 + $0x738] sm:$0xff] }
  0x8c   :  { %1395 = vmatpush1.bf16.msra.mxu0 %v1394_v61  ;;  %1437 = vmatprep.subr.bf16.mxu1 %v1436_v62  ;;  %v1456_v61 = vpack.c.bf16 %v218_v57, %v212_v56  ;;  %v211_v62 = vld [vmem:[#allocation2 + $0x550] sm:$0xff]  ;;  %v278_v56 = vld [vmem:[#allocation2 + $0x768] sm:$0xff] }
  0x8d   :  { %1397 = vmatprep.subr.bf16.mxu0 %v1396_v2  ;;  %v99_v2 = vld [vmem:[#allocation2 + $0x1d0] sm:$0xff]  ;;  %v1458_v7 = vpack.c.bf16 %v217_v63, %v211_v62  ;;  %v154_v57 = vld [vmem:[#allocation2 + $0x388] sm:$0xff]  ;;  %v153_v62 = vld [vmem:[#allocation2 + $0x380] sm:$0xff] }
  0x8f   :  { %1439 = vmatpush1.bf16.msra.mxu1 %v1438_v8  ;;  %v1586_v8 = vpack.c.bf16 %v99_v2, %v93_v0  ;;  %v159_v0 = vld [vmem:[#allocation2 + $0x3b0] sm:$0xff]  ;;  %v290_v2 = vld [vmem:[#allocation2 + $0x7c8] sm:$0xff] }
  0x90   :  { %1399 = vmatpush1.bf16.msra.mxu0 %v1398_v9  ;;  %1441 = vmatprep.subr.bf16.mxu1 %v1440_v10  ;;  %v1460_v9 = vpack.c.bf16 %v230_v4, %v224_v3  ;;  %v223_v10 = vld [vmem:[#allocation2 + $0x5b0] sm:$0xff]  ;;  %v166_v3 = vld [vmem:[#allocation2 + $0x3e8] sm:$0xff]  ;;  %v172_v4 = vld [vmem:[#allocation2 + $0x418] sm:$0xff]  ;;  %v1606_v6 = vpack.c.bf16 %v159_v0, %v153_v62 }
  0x91   :  { %1569 = vmatprep.subr.bf16.mxu0 %v1568_v14  ;;  %v111_v14 = vld [vmem:[#allocation2 + $0x230] sm:$0xff]  ;;  %v1462_v23 = vpack.c.bf16 %v229_v11, %v223_v10  ;;  %v165_v10 = vld [vmem:[#allocation2 + $0x3e0] sm:$0xff]  ;;  %v1608_v11 = vpack.c.bf16 %v172_v4, %v166_v3  ;;  %v350_v0 = vld [vmem:[#allocation2 + $0x9a8] sm:$0xff] }
  0x92   :  { %v219_v62 = vld [vmem:[#allocation2 + $0x590] sm:$0xff] }
  0x93   :  { %763 = vmatmul.mubr.f32.vlgmr.msra.gmra.mrb[0].mxu0 %v1891_v44  ;;  %1443 = vmatpush1.bf16.msra.mxu1 %v1442_v24  ;;  %v1450_v44 = vpack.c.bf16 %v193_v40, %v187_v39  ;;  %v1590_v24 = vpack.c.bf16 %v111_v14, %v105_v12  ;;  %v253_v39 = vld [vmem:[#allocation2 + $0x6a0] sm:$0xff]  ;;  %v171_v12 = vld [vmem:[#allocation2 + $0x410] sm:$0xff]  ;;  %v302_v14 = vld [vmem:[#allocation2 + $0x828] sm:$0xff] }
  0x94   :  { %1571 = vmatpush1.bf16.msra.mxu0 %v1570_v25  ;;  %1445 = vmatprep.subr.bf16.mxu1 %v1444_v26  ;;  %v1464_v25 = vpack.c.bf16 %v242_v17, %v236_v15  ;;  %v235_v26 = vld [vmem:[#allocation2 + $0x610] sm:$0xff]  ;;  %v129_v40 = vld [vmem:[#allocation2 + $0x2c0] sm:$0xff]  ;;  %v178_v15 = vld [vmem:[#allocation2 + $0x448] sm:$0xff]  ;;  %v1610_v21 = vpack.c.bf16 %v171_v12, %v165_v10 }
  0x95   :  { %1573 = vmatprep.subr.bf16.mxu0 %v1572_v30  ;;  %1046 = vmatprep.mubr.f32.mxu0 %v1879_v19  ;;  %v1454_v19 = vpack.c.bf16 %v205_v52, %v199_v51  ;;  %v123_v30 = vld [vmem:[#allocation2 + $0x290] sm:$0xff]  ;;  %v1466_v35 = vpack.c.bf16 %v241_v27, %v235_v26  ;;  %v265_v51 = vld [vmem:[#allocation2 + $0x700] sm:$0xff]  ;;  %v184_v17 = vld [vmem:[#allocation2 + $0x478] sm:$0xff] }
  0x96   :  { %v141_v52 = vld [vmem:[#allocation2 + $0x320] sm:$0xff]  ;;  %v1612_v27 = vpack.c.bf16 %v184_v17, %v178_v15  ;;  %v231_v10 = vld [vmem:[#allocation2 + $0x5f0] sm:$0xff]  ;;  %v362_v12 = vld [vmem:[#allocation2 + $0xa08] sm:$0xff] }
  0x97   :  { %1447 = vmatpush1.bf16.msra.mxu1 %v1446_v36  ;;  %v1594_v36 = vpack.c.bf16 %v123_v30, %v117_v28  ;;  %v177_v26 = vld [vmem:[#allocation2 + $0x440] sm:$0xff]  ;;  %v183_v28 = vld [vmem:[#allocation2 + $0x470] sm:$0xff]  ;;  %v314_v30 = vld [vmem:[#allocation2 + $0x888] sm:$0xff] }
  0x98   :  { %1575 = vmatpush1.bf16.msra.mxu0 %v1574_v37  ;;  %1449 = vmatprep.subr.bf16.mxu1 %v1448_v38  ;;  %v1468_v37 = vpack.c.bf16 %v254_v32, %v248_v31  ;;  %v247_v38 = vld [vmem:[#allocation2 + $0x670] sm:$0xff]  ;;  %v190_v31 = vld [vmem:[#allocation2 + $0x4a8] sm:$0xff]  ;;  %v196_v32 = vld [vmem:[#allocation2 + $0x4d8] sm:$0xff]  ;;  %v1614_v34 = vpack.c.bf16 %v183_v28, %v177_v26 }
  0x99   :  { %1577 = vmatprep.subr.bf16.mxu0 %v1576_v42  ;;  %v135_v42 = vld [vmem:[#allocation2 + $0x2f0] sm:$0xff]  ;;  %v1470_v48 = vpack.c.bf16 %v253_v39, %v247_v38  ;;  %v189_v38 = vld [vmem:[#allocation2 + $0x4a0] sm:$0xff]  ;;  %v1616_v39 = vpack.c.bf16 %v196_v32, %v190_v31  ;;  %v374_v28 = vld [vmem:[#allocation2 + $0xa68] sm:$0xff] }
  0x9a   :  { %v243_v26 = vld [vmem:[#allocation2 + $0x650] sm:$0xff] }
  0x9b   :  { %1451 = vmatpush1.bf16.msra.mxu1 %v1450_v44  ;;  %v1598_v44 = vpack.c.bf16 %v135_v42, %v129_v40  ;;  %v195_v40 = vld [vmem:[#allocation2 + $0x4d0] sm:$0xff]  ;;  %v326_v42 = vld [vmem:[#allocation2 + $0x8e8] sm:$0xff] }
  0x9c   :  { %1579 = vmatpush1.bf16.msra.mxu0 %v1578_v49  ;;  %1453 = vmatprep.subr.bf16.mxu1 %v1452_v50  ;;  %v1472_v49 = vpack.c.bf16 %v266_v45, %v260_v43  ;;  %v259_v50 = vld [vmem:[#allocation2 + $0x6d0] sm:$0xff]  ;;  %v202_v43 = vld [vmem:[#allocation2 + $0x508] sm:$0xff]  ;;  %v208_v45 = vld [vmem:[#allocation2 + $0x538] sm:$0xff]  ;;  %v1618_v47 = vpack.c.bf16 %v195_v40, %v189_v38 }
  0x9d   :  { %1581 = vmatprep.subr.bf16.mxu0 %v1580_v54  ;;  %v147_v54 = vld [vmem:[#allocation2 + $0x350] sm:$0xff]  ;;  %v1474_v58 = vpack.c.bf16 %v265_v51, %v259_v50  ;;  %v201_v50 = vld [vmem:[#allocation2 + $0x500] sm:$0xff]  ;;  %v1620_v51 = vpack.c.bf16 %v208_v45, %v202_v43  ;;  %v386_v40 = vld [vmem:[#allocation2 + $0xac8] sm:$0xff] }
  0x9e   :  { %v1602_v59 = vpack.c.bf16 %v147_v54, %v141_v52  ;;  %v207_v52 = vld [vmem:[#allocation2 + $0x530] sm:$0xff]  ;;  %v338_v54 = vld [vmem:[#allocation2 + $0x948] sm:$0xff]  ;;  %v1756_v43 = vld [vmem:[#allocation5] sm:$0xff] }
  0x9f   :  { %1455 = vmatpush1.bf16.msra.mxu1 %v1454_v19  ;;  %v1476_v19 = vpack.c.bf16 %v278_v56, %v272_v55  ;;  %v214_v55 = vld [vmem:[#allocation2 + $0x568] sm:$0xff]  ;;  %v220_v56 = vld [vmem:[#allocation2 + $0x598] sm:$0xff]  ;;  %v255_v38 = vld [vmem:[#allocation2 + $0x6b0] sm:$0xff] }
  0xa0   :  { %1583 = vmatpush1.bf16.msra.mxu0 %v1582_v60  ;;  %1457 = vmatprep.subr.bf16.mxu1 %v1456_v61  ;;  %v271_v60 = vld [vmem:[#allocation2 + $0x730] sm:$0xff]  ;;  %v277_v61 = vld [vmem:[#allocation2 + $0x760] sm:$0xff] }
  0xa1   :  { %1585 = vmatprep.subr.bf16.mxu0 %v1584_v1  ;;  %v284_v1 = vld [vmem:[#allocation2 + $0x798] sm:$0xff]  ;;  %v1478_v5 = vpack.c.bf16 %v277_v61, %v271_v60  ;;  %v213_v60 = vld [vmem:[#allocation2 + $0x560] sm:$0xff]  ;;  %v1624_v61 = vpack.c.bf16 %v220_v56, %v214_v55 }
  0xa2   :  { %v1626_v4 = vpack.c.bf16 %v219_v62, %v213_v60  ;;  %v280_v55 = vld [vmem:[#allocation2 + $0x778] sm:$0xff] }
  0xa3   :  { %1459 = vmatpush1.bf16.msra.mxu1 %v1458_v7  ;;  %v1480_v7 = vpack.c.bf16 %v290_v2, %v284_v1  ;;  %v226_v1 = vld [vmem:[#allocation2 + $0x5c8] sm:$0xff]  ;;  %v232_v2 = vld [vmem:[#allocation2 + $0x5f8] sm:$0xff] }
  0xa4   :  { %1587 = vmatpush1.bf16.msra.mxu0 %v1586_v8  ;;  %1461 = vmatprep.subr.bf16.mxu1 %v1460_v9  ;;  %v283_v8 = vld [vmem:[#allocation2 + $0x790] sm:$0xff]  ;;  %v289_v9 = vld [vmem:[#allocation2 + $0x7c0] sm:$0xff]  ;;  %v404_v62 = vld [vmem:[#allocation2 + $0xb58] sm:$0xff] }
  0xa5   :  { %1589 = vmatprep.subr.bf16.mxu0 %v1588_v13  ;;  %v296_v13 = vld [vmem:[#allocation2 + $0x7f8] sm:$0xff]  ;;  %v1482_v18 = vpack.c.bf16 %v289_v9, %v283_v8  ;;  %v225_v8 = vld [vmem:[#allocation2 + $0x5c0] sm:$0xff]  ;;  %v1628_v9 = vpack.c.bf16 %v232_v2, %v226_v1 }
  0xa6   :  { %v1630_v17 = vpack.c.bf16 %v231_v10, %v225_v8  ;;  %v292_v1 = vld [vmem:[#allocation2 + $0x7d8] sm:$0xff]  ;;  %v291_v8 = vld [vmem:[#allocation2 + $0x7d0] sm:$0xff]  ;;  %v422_v10 = vld [vmem:[#allocation2 + $0xbe8] sm:$0xff] }
  0xa7   :  { %1463 = vmatpush1.bf16.msra.mxu1 %v1462_v23  ;;  %v1484_v23 = vpack.c.bf16 %v302_v14, %v296_v13  ;;  %v238_v13 = vld [vmem:[#allocation2 + $0x628] sm:$0xff]  ;;  %v244_v14 = vld [vmem:[#allocation2 + $0x658] sm:$0xff] }
  0xa8   :  { %1591 = vmatpush1.bf16.msra.mxu0 %v1590_v24  ;;  %1465 = vmatprep.subr.bf16.mxu1 %v1464_v25  ;;  %v295_v24 = vld [vmem:[#allocation2 + $0x7f0] sm:$0xff]  ;;  %v301_v25 = vld [vmem:[#allocation2 + $0x820] sm:$0xff] }
  0xa9   :  { %1593 = vmatprep.subr.bf16.mxu0 %v1592_v29  ;;  %v308_v29 = vld [vmem:[#allocation2 + $0x858] sm:$0xff]  ;;  %v1486_v33 = vpack.c.bf16 %v301_v25, %v295_v24  ;;  %v237_v24 = vld [vmem:[#allocation2 + $0x620] sm:$0xff]  ;;  %v1632_v25 = vpack.c.bf16 %v244_v14, %v238_v13 }
  0xaa   :  { %834 = vmatmul.mubr.f32.vlgmr.msra.gmra.mrb[2].mxu1 %v1875_v16  ;;  %v160_v16 = vld [vmem:[#allocation2 + $0x3b8] sm:$0xff]  ;;  %v1634_v32 = vpack.c.bf16 %v243_v26, %v237_v24  ;;  %v303_v24 = vld [vmem:[#allocation2 + $0x830] sm:$0xff]  ;;  %v434_v26 = vld [vmem:[#allocation2 + $0xc48] sm:$0xff] }
  0xab   :  { %1467 = vmatpush1.bf16.msra.mxu1 %v1466_v35  ;;  %904 = vmatprep.mubr.f32.mxu1 %v1885_v22  ;;  %v1604_v63 = vpack.c.bf16 %v160_v16, %v154_v57  ;;  %v1488_v35 = vpack.c.bf16 %v314_v30, %v308_v29  ;;  %v1622_v16 = vpack.c.bf16 %v207_v52, %v201_v50  ;;  %v250_v29 = vld [vmem:[#allocation2 + $0x688] sm:$0xff]  ;;  %v256_v30 = vld [vmem:[#allocation2 + $0x6b8] sm:$0xff] }
  0xac   :  { %1595 = vmatpush1.bf16.msra.mxu0 %v1594_v36  ;;  %1469 = vmatprep.subr.bf16.mxu1 %v1468_v37  ;;  %v307_v36 = vld [vmem:[#allocation2 + $0x850] sm:$0xff]  ;;  %v313_v37 = vld [vmem:[#allocation2 + $0x880] sm:$0xff]  ;;  %v392_v52 = vld [vmem:[#allocation2 + $0xaf8] sm:$0xff] }
  0xad   :  { %1597 = vmatprep.subr.bf16.mxu0 %v1596_v41  ;;  %v320_v41 = vld [vmem:[#allocation2 + $0x8b8] sm:$0xff]  ;;  %v1490_v20 = vpack.c.bf16 %v313_v37, %v307_v36  ;;  %v249_v36 = vld [vmem:[#allocation2 + $0x680] sm:$0xff]  ;;  %v1636_v37 = vpack.c.bf16 %v256_v30, %v250_v29 }
  0xaf   :  { %1471 = vmatpush1.bf16.msra.mxu1 %v1470_v48  ;;  %v1492_v48 = vpack.c.bf16 %v326_v42, %v320_v41  ;;  %v262_v41 = vld [vmem:[#allocation2 + $0x6e8] sm:$0xff]  ;;  %v268_v42 = vld [vmem:[#allocation2 + $0x718] sm:$0xff] }
  0xb0   :  { %1599 = vmatpush1.bf16.msra.mxu0 %v1598_v44  ;;  %1473 = vmatprep.subr.bf16.mxu1 %v1472_v49  ;;  %v319_v44 = vld [vmem:[#allocation2 + $0x8b0] sm:$0xff]  ;;  %v325_v49 = vld [vmem:[#allocation2 + $0x8e0] sm:$0xff]  ;;  %v1640_v50 = vpack.c.bf16 %v268_v42, %v262_v41 }
  0xb1   :  { %1601 = vmatprep.subr.bf16.mxu0 %v1600_v53  ;;  %v332_v53 = vld [vmem:[#allocation2 + $0x918] sm:$0xff]  ;;  %v1494_v57 = vpack.c.bf16 %v325_v49, %v319_v44  ;;  %v385_v44 = vld [vmem:[#allocation2 + $0xac0] sm:$0xff] }
  0xb2   :  { %v261_v49 = vld [vmem:[#allocation2 + $0x6e0] sm:$0xff] }
  0xb3   :  { %1475 = vmatpush1.bf16.msra.mxu1 %v1474_v58  ;;  %v1496_v58 = vpack.c.bf16 %v338_v54, %v332_v53  ;;  %v398_v53 = vld [vmem:[#allocation2 + $0xb28] sm:$0xff] }
  0xb4   :  { %1603 = vmatpush1.bf16.msra.mxu0 %v1602_v59  ;;  %1477 = vmatprep.subr.bf16.mxu1 %v1476_v19  ;;  %v331_v59 = vld [vmem:[#allocation2 + $0x910] sm:$0xff]  ;;  %v337_v19 = vld [vmem:[#allocation2 + $0x940] sm:$0xff]  ;;  %v274_v54 = vld [vmem:[#allocation2 + $0x748] sm:$0xff] }
  0xb5   :  { %1605 = vmatprep.subr.bf16.mxu0 %v1604_v63  ;;  %v344_v63 = vld [vmem:[#allocation2 + $0x978] sm:$0xff]  ;;  %v1498_v3 = vpack.c.bf16 %v337_v19, %v331_v59  ;;  %v397_v59 = vld [vmem:[#allocation2 + $0xb20] sm:$0xff]  ;;  %v1644_v60 = vpack.c.bf16 %v280_v55, %v274_v54 }
  0xb6   :  { %v273_v19 = vld [vmem:[#allocation2 + $0x740] sm:$0xff] }
  0xb7   :  { %1479 = vmatpush1.bf16.msra.mxu1 %v1478_v5  ;;  %v1500_v5 = vpack.c.bf16 %v350_v0, %v344_v63  ;;  %v410_v63 = vld [vmem:[#allocation2 + $0xb88] sm:$0xff] }
  0xb8   :  { %1607 = vmatpush1.bf16.msra.mxu0 %v1606_v6  ;;  %1481 = vmatprep.subr.bf16.mxu1 %v1480_v7  ;;  %v343_v6 = vld [vmem:[#allocation2 + $0x970] sm:$0xff]  ;;  %v349_v7 = vld [vmem:[#allocation2 + $0x9a0] sm:$0xff]  ;;  %v286_v0 = vld [vmem:[#allocation2 + $0x7a8] sm:$0xff] }
  0xb9   :  { %1609 = vmatprep.subr.bf16.mxu0 %v1608_v11  ;;  %v356_v11 = vld [vmem:[#allocation2 + $0x9d8] sm:$0xff]  ;;  %v1502_v15 = vpack.c.bf16 %v349_v7, %v343_v6  ;;  %v285_v6 = vld [vmem:[#allocation2 + $0x7a0] sm:$0xff]  ;;  %v1648_v7 = vpack.c.bf16 %v292_v1, %v286_v0 }
  0xba   :  { %v1650_v14 = vpack.c.bf16 %v291_v8, %v285_v6  ;;  %v351_v6 = vld [vmem:[#allocation2 + $0x9b0] sm:$0xff]  ;;  %v482_v8 = vld [vmem:[#allocation2 + $0xdc8] sm:$0xff] }
  0xbb   :  { %1483 = vmatpush1.bf16.msra.mxu1 %v1482_v18  ;;  %v1504_v18 = vpack.c.bf16 %v362_v12, %v356_v11  ;;  %v298_v11 = vld [vmem:[#allocation2 + $0x808] sm:$0xff]  ;;  %v304_v12 = vld [vmem:[#allocation2 + $0x838] sm:$0xff] }
  0xbc   :  { %1611 = vmatpush1.bf16.msra.mxu0 %v1610_v21  ;;  %1485 = vmatprep.subr.bf16.mxu1 %v1484_v23  ;;  %v355_v21 = vld [vmem:[#allocation2 + $0x9d0] sm:$0xff]  ;;  %v361_v23 = vld [vmem:[#allocation2 + $0xa00] sm:$0xff] }
  0xbd   :  { %1613 = vmatprep.subr.bf16.mxu0 %v1612_v27  ;;  %v368_v27 = vld [vmem:[#allocation2 + $0xa38] sm:$0xff]  ;;  %v1506_v31 = vpack.c.bf16 %v361_v23, %v355_v21  ;;  %v297_v21 = vld [vmem:[#allocation2 + $0x800] sm:$0xff]  ;;  %v1652_v23 = vpack.c.bf16 %v304_v12, %v298_v11 }
  0xbe   :  { %v1654_v30 = vpack.c.bf16 %v303_v24, %v297_v21  ;;  %v363_v21 = vld [vmem:[#allocation2 + $0xa10] sm:$0xff]  ;;  %v494_v24 = vld [vmem:[#allocation2 + $0xe28] sm:$0xff] }
  0xbf   :  { %1487 = vmatpush1.bf16.msra.mxu1 %v1486_v33  ;;  %v1508_v33 = vpack.c.bf16 %v374_v28, %v368_v27  ;;  %v310_v27 = vld [vmem:[#allocation2 + $0x868] sm:$0xff]  ;;  %v316_v28 = vld [vmem:[#allocation2 + $0x898] sm:$0xff] }
  0xc0   :  { %1615 = vmatpush1.bf16.msra.mxu0 %v1614_v34  ;;  %1489 = vmatprep.subr.bf16.mxu1 %v1488_v35  ;;  %v367_v34 = vld [vmem:[#allocation2 + $0xa30] sm:$0xff]  ;;  %v373_v35 = vld [vmem:[#allocation2 + $0xa60] sm:$0xff] }
  0xc1   :  { %1617 = vmatprep.subr.bf16.mxu0 %v1616_v39  ;;  %v380_v39 = vld [vmem:[#allocation2 + $0xa98] sm:$0xff]  ;;  %v1510_v45 = vpack.c.bf16 %v373_v35, %v367_v34  ;;  %v309_v34 = vld [vmem:[#allocation2 + $0x860] sm:$0xff]  ;;  %v1656_v35 = vpack.c.bf16 %v316_v28, %v310_v27 }
  0xc3   :  { %1491 = vmatpush1.bf16.msra.mxu1 %v1490_v20  ;;  %v1638_v20 = vpack.c.bf16 %v255_v38, %v249_v36  ;;  %v315_v36 = vld [vmem:[#allocation2 + $0x890] sm:$0xff]  ;;  %v446_v38 = vld [vmem:[#allocation2 + $0xca8] sm:$0xff] }
  0xc4   :  { %1619 = vmatpush1.bf16.msra.mxu0 %v1618_v47  ;;  %1493 = vmatprep.subr.bf16.mxu1 %v1492_v48  ;;  %v1512_v47 = vpack.c.bf16 %v386_v40, %v380_v39  ;;  %v379_v48 = vld [vmem:[#allocation2 + $0xa90] sm:$0xff]  ;;  %v322_v39 = vld [vmem:[#allocation2 + $0x8c8] sm:$0xff]  ;;  %v328_v40 = vld [vmem:[#allocation2 + $0x8f8] sm:$0xff]  ;;  %v1658_v42 = vpack.c.bf16 %v315_v36, %v309_v34 }
  0xc5   :  { %1621 = vmatprep.subr.bf16.mxu0 %v1620_v51  ;;  %v267_v51 = vld [vmem:[#allocation2 + $0x710] sm:$0xff]  ;;  %v1514_v56 = vpack.c.bf16 %v385_v44, %v379_v48  ;;  %v1660_v48 = vpack.c.bf16 %v328_v40, %v322_v39  ;;  %v506_v36 = vld [vmem:[#allocation2 + $0xe88] sm:$0xff] }
  0xc6   :  { %v327_v44 = vld [vmem:[#allocation2 + $0x8f0] sm:$0xff] }
  0xc7   :  { %1495 = vmatpush1.bf16.msra.mxu1 %v1494_v57  ;;  %v1642_v57 = vpack.c.bf16 %v267_v51, %v261_v49  ;;  %v452_v49 = vld [vmem:[#allocation2 + $0xcd8] sm:$0xff]  ;;  %v1905_v51 = vld [vmem:[#allocation5 + $0x8] sm:$0xff]  ;;  %v375_v34 = vld [vmem:[#allocation2 + $0xa70] sm:$0xff] }
  0xc8   :  { %1623 = vmatpush1.bf16.msra.mxu0 %v1622_v16  ;;  %1497 = vmatprep.subr.bf16.mxu1 %v1496_v58  ;;  %v1516_v16 = vpack.c.bf16 %v398_v53, %v392_v52  ;;  %v391_v58 = vld [vmem:[#allocation2 + $0xaf0] sm:$0xff]  ;;  %v334_v52 = vld [vmem:[#allocation2 + $0x928] sm:$0xff]  ;;  %v340_v53 = vld [vmem:[#allocation2 + $0x958] sm:$0xff] }
  0xc9   :  { %1625 = vmatprep.subr.bf16.mxu0 %v1624_v61  ;;  %v279_v61 = vld [vmem:[#allocation2 + $0x770] sm:$0xff] }
  0xca   :  { %v1646_v2 = vpack.c.bf16 %v279_v61, %v273_v19  ;;  %v339_v19 = vld [vmem:[#allocation2 + $0x950] sm:$0xff]  ;;  %v470_v61 = vld [vmem:[#allocation2 + $0xd68] sm:$0xff] }
  0xcb   :  { %1499 = vmatpush1.bf16.msra.mxu1 %v1498_v3  ;;  %v1520_v3 = vpack.c.bf16 %v410_v63, %v404_v62  ;;  %v346_v62 = vld [vmem:[#allocation2 + $0x988] sm:$0xff]  ;;  %v352_v63 = vld [vmem:[#allocation2 + $0x9b8] sm:$0xff] }
  0xcc   :  { %1627 = vmatpush1.bf16.msra.mxu0 %v1626_v4  ;;  %1501 = vmatprep.subr.bf16.mxu1 %v1500_v5  ;;  %v403_v4 = vld [vmem:[#allocation2 + $0xb50] sm:$0xff]  ;;  %v409_v5 = vld [vmem:[#allocation2 + $0xb80] sm:$0xff] }
  0xcd   :  { %1629 = vmatprep.subr.bf16.mxu0 %v1628_v9  ;;  %v416_v9 = vld [vmem:[#allocation2 + $0xbb8] sm:$0xff]  ;;  %v1522_v13 = vpack.c.bf16 %v409_v5, %v403_v4  ;;  %v345_v4 = vld [vmem:[#allocation2 + $0x980] sm:$0xff]  ;;  %v1668_v5 = vpack.c.bf16 %v352_v63, %v346_v62 }
  0xce   :  { %v1670_v12 = vpack.c.bf16 %v351_v6, %v345_v4  ;;  %v411_v4 = vld [vmem:[#allocation2 + $0xb90] sm:$0xff]  ;;  %v542_v6 = vld [vmem:[#allocation2 + $0xfa8] sm:$0xff] }
  0xcf   :  { %1503 = vmatpush1.bf16.msra.mxu1 %v1502_v15  ;;  %v1524_v15 = vpack.c.bf16 %v422_v10, %v416_v9  ;;  %v358_v9 = vld [vmem:[#allocation2 + $0x9e8] sm:$0xff]  ;;  %v364_v10 = vld [vmem:[#allocation2 + $0xa18] sm:$0xff] }
  0xd0   :  { %1631 = vmatpush1.bf16.msra.mxu0 %v1630_v17  ;;  %1505 = vmatprep.subr.bf16.mxu1 %v1504_v18  ;;  %v415_v17 = vld [vmem:[#allocation2 + $0xbb0] sm:$0xff]  ;;  %v421_v18 = vld [vmem:[#allocation2 + $0xbe0] sm:$0xff] }
  0xd1   :  { %1633 = vmatprep.subr.bf16.mxu0 %v1632_v25  ;;  %v428_v25 = vld [vmem:[#allocation2 + $0xc18] sm:$0xff]  ;;  %v1526_v29 = vpack.c.bf16 %v421_v18, %v415_v17  ;;  %v357_v17 = vld [vmem:[#allocation2 + $0x9e0] sm:$0xff]  ;;  %v1672_v18 = vpack.c.bf16 %v364_v10, %v358_v9 }
  0xd2   :  { %v1674_v28 = vpack.c.bf16 %v363_v21, %v357_v17  ;;  %v423_v17 = vld [vmem:[#allocation2 + $0xbf0] sm:$0xff]  ;;  %v436_v21 = vld [vmem:[#allocation2 + $0xc58] sm:$0xff] }
  0xd3   :  { %1507 = vmatpush1.bf16.msra.mxu1 %v1506_v31  ;;  %1047 = vmatmul.mubr.f32.vlgmr.msra.gmra.mrb[2].mxu0 %v1756_v43  ;;  %v1528_v31 = vpack.c.bf16 %v434_v26, %v428_v25  ;;  %v370_v25 = vld [vmem:[#allocation2 + $0xa48] sm:$0xff]  ;;  %v376_v26 = vld [vmem:[#allocation2 + $0xa78] sm:$0xff] }
  0xd4   :  { %1635 = vmatpush1.bf16.msra.mxu0 %v1634_v32  ;;  %1509 = vmatprep.subr.bf16.mxu1 %v1508_v33  ;;  %v427_v32 = vld [vmem:[#allocation2 + $0xc10] sm:$0xff]  ;;  %v433_v33 = vld [vmem:[#allocation2 + $0xc40] sm:$0xff] }
  0xd5   :  { %1637 = vmatprep.subr.bf16.mxu0 %v1636_v37  ;;  %1117 = vmatprep.mubr.f32.mxu0 %v1885_v22  ;;  %v1518_v22 = vpack.c.bf16 %v397_v59, %v391_v58  ;;  %v440_v37 = vld [vmem:[#allocation2 + $0xc78] sm:$0xff]  ;;  %v1530_v41 = vpack.c.bf16 %v433_v33, %v427_v32  ;;  %v333_v58 = vld [vmem:[#allocation2 + $0x920] sm:$0xff]  ;;  %v1664_v59 = vpack.c.bf16 %v340_v53, %v334_v52 }
  0xd6   :  { %v1532_v43 = vpack.c.bf16 %v446_v38, %v440_v37  ;;  %v1666_v1 = vpack.c.bf16 %v339_v19, %v333_v58  ;;  %v369_v32 = vld [vmem:[#allocation2 + $0xa40] sm:$0xff]  ;;  %v1676_v33 = vpack.c.bf16 %v376_v26, %v370_v25  ;;  %v382_v37 = vld [vmem:[#allocation2 + $0xaa8] sm:$0xff]  ;;  %v388_v38 = vld [vmem:[#allocation2 + $0xad8] sm:$0xff] }
  0xd7   :  { %1511 = vmatpush1.bf16.msra.mxu1 %v1510_v45  ;;  %v439_v45 = vld [vmem:[#allocation2 + $0xc70] sm:$0xff]  ;;  %v1678_v40 = vpack.c.bf16 %v375_v34, %v369_v32  ;;  %v530_v19 = vld [vmem:[#allocation2 + $0xf48] sm:$0xff]  ;;  %v429_v26 = vld [vmem:[#allocation2 + $0xc20] sm:$0xff] }
  0xd8   :  { %1639 = vmatpush1.bf16.msra.mxu0 %v1638_v20  ;;  %1513 = vmatprep.subr.bf16.mxu1 %v1512_v47  ;;  %v445_v20 = vld [vmem:[#allocation2 + $0xca0] sm:$0xff]  ;;  %v399_v58 = vld [vmem:[#allocation2 + $0xb30] sm:$0xff] }
  0xd9   :  { %1641 = vmatprep.subr.bf16.mxu0 %v1640_v50  ;;  %v321_v47 = vld [vmem:[#allocation2 + $0x8c0] sm:$0xff]  ;;  %v458_v50 = vld [vmem:[#allocation2 + $0xd08] sm:$0xff]  ;;  %v1534_v54 = vpack.c.bf16 %v445_v20, %v439_v45  ;;  %v1680_v20 = vpack.c.bf16 %v388_v38, %v382_v37  ;;  %v1910_v34 = vld [vmem:[#allocation5 + $0x10] sm:$0xff] }
  0xda   :  { %v1662_v55 = vpack.c.bf16 %v327_v44, %v321_v47  ;;  %v381_v45 = vld [vmem:[#allocation2 + $0xaa0] sm:$0xff]  ;;  %v387_v47 = vld [vmem:[#allocation2 + $0xad0] sm:$0xff]  ;;  %v518_v44 = vld [vmem:[#allocation2 + $0xee8] sm:$0xff] }
  0xdb   :  { %1515 = vmatpush1.bf16.msra.mxu1 %v1514_v56  ;;  %v1536_v56 = vpack.c.bf16 %v458_v50, %v452_v49  ;;  %v394_v49 = vld [vmem:[#allocation2 + $0xb08] sm:$0xff]  ;;  %v400_v50 = vld [vmem:[#allocation2 + $0xb38] sm:$0xff]  ;;  %v1682_v53 = vpack.c.bf16 %v387_v47, %v381_v45  ;;  %v441_v32 = vld [vmem:[#allocation2 + $0xc80] sm:$0xff] }
  0xdc   :  { %1643 = vmatpush1.bf16.msra.mxu0 %v1642_v57  ;;  %1517 = vmatprep.subr.bf16.mxu1 %v1516_v16  ;;  %v451_v57 = vld [vmem:[#allocation2 + $0xcd0] sm:$0xff]  ;;  %v457_v16 = vld [vmem:[#allocation2 + $0xd00] sm:$0xff] }
  0xdd   :  { %1645 = vmatprep.subr.bf16.mxu0 %v1644_v60  ;;  %v464_v60 = vld [vmem:[#allocation2 + $0xd38] sm:$0xff]  ;;  %v1538_v0 = vpack.c.bf16 %v457_v16, %v451_v57  ;;  %v393_v57 = vld [vmem:[#allocation2 + $0xb00] sm:$0xff]  ;;  %v1684_v16 = vpack.c.bf16 %v400_v50, %v394_v49  ;;  %v471_v47 = vld [vmem:[#allocation2 + $0xd70] sm:$0xff] }
  0xde   :  { %v1686_v63 = vpack.c.bf16 %v399_v58, %v393_v57  ;;  %v477_v50 = vld [vmem:[#allocation2 + $0xda0] sm:$0xff]  ;;  %v495_v57 = vld [vmem:[#allocation2 + $0xe30] sm:$0xff]  ;;  %v508_v58 = vld [vmem:[#allocation2 + $0xe98] sm:$0xff] }
  0xdf   :  { %1519 = vmatpush1.bf16.msra.mxu1 %v1518_v22  ;;  %v1540_v22 = vpack.c.bf16 %v470_v61, %v464_v60  ;;  %v406_v60 = vld [vmem:[#allocation2 + $0xb68] sm:$0xff]  ;;  %v412_v61 = vld [vmem:[#allocation2 + $0xb98] sm:$0xff] }
  0xe0   :  { %1647 = vmatpush1.bf16.msra.mxu0 %v1646_v2  ;;  %1521 = vmatprep.subr.bf16.mxu1 %v1520_v3  ;;  %v463_v2 = vld [vmem:[#allocation2 + $0xd30] sm:$0xff]  ;;  %v469_v3 = vld [vmem:[#allocation2 + $0xd60] sm:$0xff] }
  0xe1   :  { %1649 = vmatprep.subr.bf16.mxu0 %v1648_v7  ;;  %v476_v7 = vld [vmem:[#allocation2 + $0xd98] sm:$0xff]  ;;  %v1542_v11 = vpack.c.bf16 %v469_v3, %v463_v2  ;;  %v405_v2 = vld [vmem:[#allocation2 + $0xb60] sm:$0xff]  ;;  %v1688_v3 = vpack.c.bf16 %v412_v61, %v406_v60  ;;  %v507_v61 = vld [vmem:[#allocation2 + $0xe90] sm:$0xff] }
  0xe2   :  { %v1690_v10 = vpack.c.bf16 %v411_v4, %v405_v2  ;;  %v501_v60 = vld [vmem:[#allocation2 + $0xe60] sm:$0xff]  ;;  %v519_v2 = vld [vmem:[#allocation2 + $0xef0] sm:$0xff]  ;;  %v532_v4 = vld [vmem:[#allocation2 + $0xf58] sm:$0xff] }
  0xe3   :  { %1523 = vmatpush1.bf16.msra.mxu1 %v1522_v13  ;;  %v1544_v13 = vpack.c.bf16 %v482_v8, %v476_v7  ;;  %v418_v7 = vld [vmem:[#allocation2 + $0xbc8] sm:$0xff]  ;;  %v424_v8 = vld [vmem:[#allocation2 + $0xbf8] sm:$0xff] }
  0xe4   :  { %1651 = vmatpush1.bf16.msra.mxu0 %v1650_v14  ;;  %1525 = vmatprep.subr.bf16.mxu1 %v1524_v15  ;;  %v475_v14 = vld [vmem:[#allocation2 + $0xd90] sm:$0xff]  ;;  %v481_v15 = vld [vmem:[#allocation2 + $0xdc0] sm:$0xff] }
  0xe5   :  { %1653 = vmatprep.subr.bf16.mxu0 %v1652_v23  ;;  %v488_v23 = vld [vmem:[#allocation2 + $0xdf8] sm:$0xff]  ;;  %v1546_v27 = vpack.c.bf16 %v481_v15, %v475_v14  ;;  %v1692_v14 = vpack.c.bf16 %v424_v8, %v418_v7  ;;  %v417_v15 = vld [vmem:[#allocation2 + $0xbc0] sm:$0xff]  ;;  %v531_v8 = vld [vmem:[#allocation2 + $0xf50] sm:$0xff] }
  0xe6   :  { %v525_v7 = vld [vmem:[#allocation2 + $0xf20] sm:$0xff] }
  0xe7   :  { %1527 = vmatpush1.bf16.msra.mxu1 %v1526_v29  ;;  %v1548_v29 = vpack.c.bf16 %v494_v24, %v488_v23  ;;  %v1694_v24 = vpack.c.bf16 %v423_v17, %v417_v15 }
  0xe8   :  { %1655 = vmatpush1.bf16.msra.mxu0 %v1654_v30  ;;  %1529 = vmatprep.subr.bf16.mxu1 %v1528_v31  ;;  %v487_v30 = vld [vmem:[#allocation2 + $0xdf0] sm:$0xff]  ;;  %v493_v31 = vld [vmem:[#allocation2 + $0xe20] sm:$0xff] }
  0xe9   :  { %1657 = vmatprep.subr.bf16.mxu0 %v1656_v35  ;;  %v500_v35 = vld [vmem:[#allocation2 + $0xe58] sm:$0xff]  ;;  %v1550_v39 = vpack.c.bf16 %v493_v31, %v487_v30 }
  0xea   :  { %905 = vmatmul.mubr.f32.vlgmr.msra.gmra.mrb[2].mxu1 %v1905_v51 }
  0xeb   :  { %1531 = vmatpush1.bf16.msra.mxu1 %v1530_v41  ;;  %1230 = vmatprep.mubr.msk.f32.mxu1 %vm553_vm0, %v1896_v46  ;;  %v1552_v41 = vpack.c.bf16 %v506_v36, %v500_v35  ;;  %v454_v35 = vld [vmem:[#allocation2 + $0xce8] sm:$0xff]  ;;  %v460_v36 = vld [vmem:[#allocation2 + $0xd18] sm:$0xff] }
  0xec   :  { %1659 = vmatpush1.bf16.msra.mxu0 %v1658_v42  ;;  %1533 = vmatprep.subr.bf16.mxu1 %v1532_v43  ;;  %v499_v42 = vld [vmem:[#allocation2 + $0xe50] sm:$0xff]  ;;  %v505_v43 = vld [vmem:[#allocation2 + $0xe80] sm:$0xff]  ;;  %v1704_v38 = vpack.c.bf16 %v460_v36, %v454_v35 }
  0xed   :  { %1661 = vmatprep.subr.bf16.mxu0 %v1660_v48  ;;  %v512_v48 = vld [vmem:[#allocation2 + $0xeb8] sm:$0xff]  ;;  %v1554_v52 = vpack.c.bf16 %v505_v43, %v499_v42 }
  0xee   :  { %v472_v42 = vld [vmem:[#allocation2 + $0xd78] sm:$0xff] }
  0xef   :  { %1535 = vmatpush1.bf16.msra.mxu1 %v1534_v54  ;;  %v1556_v54 = vpack.c.bf16 %v518_v44, %v512_v48  ;;  %v478_v48 = vld [vmem:[#allocation2 + $0xda8] sm:$0xff]  ;;  %v484_v44 = vld [vmem:[#allocation2 + $0xdd8] sm:$0xff] }
  0xf0   :  { %1663 = vmatpush1.bf16.msra.mxu0 %v1662_v55  ;;  %1537 = vmatprep.subr.bf16.mxu1 %v1536_v56  ;;  %v511_v55 = vld [vmem:[#allocation2 + $0xeb0] sm:$0xff]  ;;  %v517_v56 = vld [vmem:[#allocation2 + $0xee0] sm:$0xff]  ;;  %v1712_v49 = vpack.c.bf16 %v484_v44, %v478_v48 }
  0xf1   :  { %1665 = vmatprep.subr.bf16.mxu0 %v1664_v59  ;;  %v524_v59 = vld [vmem:[#allocation2 + $0xf18] sm:$0xff]  ;;  %v1558_v62 = vpack.c.bf16 %v517_v56, %v511_v55  ;;  %v489_v56 = vld [vmem:[#allocation2 + $0xe00] sm:$0xff] }
  0xf3   :  { %1539 = vmatpush1.bf16.msra.mxu1 %v1538_v0  ;;  %v1560_v0 = vpack.c.bf16 %v530_v19, %v524_v59  ;;  %v1718_v59 = vpack.c.bf16 %v495_v57, %v489_v56 }
  0xf4   :  { %1667 = vmatpush1.bf16.msra.mxu0 %v1666_v1  ;;  %1541 = vmatprep.subr.bf16.mxu1 %v1540_v22  ;;  %v523_v1 = vld [vmem:[#allocation2 + $0xf10] sm:$0xff]  ;;  %v529_v22 = vld [vmem:[#allocation2 + $0xf40] sm:$0xff] }
  0xf5   :  { %1669 = vmatprep.subr.bf16.mxu0 %v1668_v5  ;;  %v536_v5 = vld [vmem:[#allocation2 + $0xf78] sm:$0xff]  ;;  %v1562_v9 = vpack.c.bf16 %v529_v22, %v523_v1  ;;  %v513_v22 = vld [vmem:[#allocation2 + $0xec0] sm:$0xff] }
  0xf7   :  { %1543 = vmatpush1.bf16.msra.mxu1 %v1542_v11  ;;  %v1564_v11 = vpack.c.bf16 %v542_v6, %v536_v5  ;;  %v1726_v5 = vpack.c.bf16 %v519_v2, %v513_v22 }
  0xf8   :  { %1671 = vmatpush1.bf16.msra.mxu0 %v1670_v12  ;;  %1545 = vmatprep.subr.bf16.mxu1 %v1544_v13  ;;  %v535_v12 = vld [vmem:[#allocation2 + $0xf70] sm:$0xff]  ;;  %v541_v13 = vld [vmem:[#allocation2 + $0xfa0] sm:$0xff] }
  0xf9   :  { %1673 = vmatprep.subr.bf16.mxu0 %v1672_v18  ;;  %v430_v18 = vld [vmem:[#allocation2 + $0xc28] sm:$0xff]  ;;  %v1566_v23 = vpack.c.bf16 %v541_v13, %v535_v12  ;;  %v537_v13 = vld [vmem:[#allocation2 + $0xf80] sm:$0xff] }
  0xfa   :  { %v1696_v25 = vpack.c.bf16 %v436_v21, %v430_v18 }
  0xfb   :  { %1547 = vmatpush1.bf16.msra.mxu1 %v1546_v27  ;;  %v435_v27 = vld [vmem:[#allocation2 + $0xc50] sm:$0xff] }
  0xfc   :  { %1675 = vmatpush1.bf16.msra.mxu0 %v1674_v28  ;;  %1549 = vmatprep.subr.bf16.mxu1 %v1548_v29  ;;  %v442_v28 = vld [vmem:[#allocation2 + $0xc88] sm:$0xff]  ;;  %v448_v29 = vld [vmem:[#allocation2 + $0xcb8] sm:$0xff]  ;;  %v1698_v30 = vpack.c.bf16 %v435_v27, %v429_v26 }
  0xfd   :  { %1677 = vmatprep.subr.bf16.mxu0 %v1676_v33  ;;  %v1700_v31 = vpack.c.bf16 %v448_v29, %v442_v28  ;;  %v447_v33 = vld [vmem:[#allocation2 + $0xcb0] sm:$0xff] }
  0xfe   :  { %v1702_v37 = vpack.c.bf16 %v447_v33, %v441_v32 }
  0xff   :  { %1551 = vmatpush1.bf16.msra.mxu1 %v1550_v39  ;;  %v453_v39 = vld [vmem:[#allocation2 + $0xce0] sm:$0xff] }
 0x100   :  { %1679 = vmatpush1.bf16.msra.mxu0 %v1678_v40  ;;  %1553 = vmatprep.subr.bf16.mxu1 %v1552_v41  ;;  %v459_v40 = vld [vmem:[#allocation2 + $0xd10] sm:$0xff]  ;;  %v466_v41 = vld [vmem:[#allocation2 + $0xd48] sm:$0xff] }
 0x101   :  { %1681 = vmatprep.subr.bf16.mxu0 %v1680_v20  ;;  %v1706_v43 = vpack.c.bf16 %v459_v40, %v453_v39  ;;  %v1708_v45 = vpack.c.bf16 %v472_v42, %v466_v41  ;;  %v465_v20 = vld [vmem:[#allocation2 + $0xd40] sm:$0xff] }
 0x103   :  { %1555 = vmatpush1.bf16.msra.mxu1 %v1554_v52  ;;  %v490_v52 = vld [vmem:[#allocation2 + $0xe08] sm:$0xff] }
 0x104   :  { %1683 = vmatpush1.bf16.msra.mxu0 %v1682_v53  ;;  %1557 = vmatprep.subr.bf16.mxu1 %v1556_v54  ;;  %v496_v53 = vld [vmem:[#allocation2 + $0xe38] sm:$0xff] }
 0x105   :  { %1685 = vmatprep.subr.bf16.mxu0 %v1684_v16  ;;  %v1716_v55 = vpack.c.bf16 %v496_v53, %v490_v52  ;;  %v502_v16 = vld [vmem:[#allocation2 + $0xe68] sm:$0xff] }
 0x106   :  { %v1720_v19 = vpack.c.bf16 %v508_v58, %v502_v16 }
 0x107   :  { %1559 = vmatpush1.bf16.msra.mxu1 %v1558_v62  ;;  %v514_v62 = vld [vmem:[#allocation2 + $0xec8] sm:$0xff] }
 0x108   :  { %1687 = vmatpush1.bf16.msra.mxu0 %v1686_v63  ;;  %1561 = vmatprep.subr.bf16.mxu1 %v1560_v0  ;;  %v520_v63 = vld [vmem:[#allocation2 + $0xef8] sm:$0xff]  ;;  %v1722_v0 = vpack.c.bf16 %v507_v61, %v501_v60 }
 0x109   :  { %1689 = vmatprep.subr.bf16.mxu0 %v1688_v3  ;;  %v1724_v1 = vpack.c.bf16 %v520_v63, %v514_v62  ;;  %v526_v3 = vld [vmem:[#allocation2 + $0xf28] sm:$0xff] }
 0x10a   :  { %v1728_v6 = vpack.c.bf16 %v532_v4, %v526_v3 }
 0x10b   :  { %1563 = vmatpush1.bf16.msra.mxu1 %v1562_v9  ;;  %v538_v9 = vld [vmem:[#allocation2 + $0xf88] sm:$0xff] }
 0x10c   :  { %1691 = vmatpush1.bf16.msra.mxu0 %v1690_v10  ;;  %1565 = vmatprep.subr.bf16.mxu1 %v1564_v11  ;;  %v544_v10 = vld [vmem:[#allocation2 + $0xfb8] sm:$0xff]  ;;  %v1730_v11 = vpack.c.bf16 %v531_v8, %v525_v7 }
 0x10d   :  { %1693 = vmatprep.subr.bf16.mxu0 %v1692_v14  ;;  %v1732_v12 = vpack.c.bf16 %v544_v10, %v538_v9  ;;  %v543_v14 = vld [vmem:[#allocation2 + $0xfb0] sm:$0xff] }
 0x10e   :  { %v1734_v15 = vpack.c.bf16 %v543_v14, %v537_v13 }
 0x10f   :  { %1567 = vmatpush1.bf16.msra.mxu1 %v1566_v23 }
 0x110   :  { %1695 = vmatpush1.bf16.msra.mxu0 %v1694_v24 }
 0x111   :  { %1697 = vmatprep.subr.bf16.mxu0 %v1696_v25 }
 0x112   :  { %976 = vmatmul.mubr.f32.vlgmr.msra.gmra.mrb[2].mxu1 %v1910_v34 }
 0x113   :  { %1118 = vmatmul.mubr.f32.vlgmr.msra.gmra.mrb[2].mxu0 %v1905_v51  ;;  %v1710_v51 = vpack.c.bf16 %v471_v47, %v465_v20 }
 0x114   :  { %1699 = vmatpush1.bf16.msra.mxu0 %v1698_v30  ;;  %1231 = vmatprep.mubr.msk.f32.mxu0 %vm553_vm0, %v1896_v46  ;;  %v483_v46 = vld [vmem:[#allocation2 + $0xdd0] sm:$0xff] }
 0x115   :  { %1701 = vmatprep.subr.bf16.mxu0 %v1700_v31  ;;  %v1714_v54 = vpack.c.bf16 %v483_v46, %v477_v50 }
 0x118   :  { %1703 = vmatpush1.bf16.msra.mxu0 %v1702_v37 }
 0x119   :  { %1705 = vmatprep.subr.bf16.mxu0 %v1704_v38 }
 0x11c   :  { %1707 = vmatpush1.bf16.msra.mxu0 %v1706_v43 }
 0x11d   :  { %1709 = vmatprep.subr.bf16.mxu0 %v1708_v45 }
 0x120   :  { %1711 = vmatpush1.bf16.msra.mxu0 %v1710_v51 }
 0x121   :  { %1713 = vmatprep.subr.bf16.mxu0 %v1712_v49 }
 0x124   :  { %1715 = vmatpush1.bf16.msra.mxu0 %v1714_v54 }
 0x125   :  { %1717 = vmatprep.subr.bf16.mxu0 %v1716_v55 }
 0x128   :  { %1719 = vmatpush1.bf16.msra.mxu0 %v1718_v59 }
 0x129   :  { %1721 = vmatprep.subr.bf16.mxu0 %v1720_v19 }
 0x12c   :  { %1723 = vmatpush1.bf16.msra.mxu0 %v1722_v0 }
 0x12d   :  { %1725 = vmatprep.subr.bf16.mxu0 %v1724_v1 }
 0x130   :  { %1727 = vmatpush1.bf16.msra.mxu0 %v1726_v5 }
 0x131   :  { %1729 = vmatprep.subr.bf16.mxu0 %v1728_v6 }
 0x134   :  { %1731 = vmatpush1.bf16.msra.mxu0 %v1730_v11 }
 0x135   :  { %1733 = vmatprep.subr.bf16.mxu0 %v1732_v12 }
 0x138   :  { %1735 = vmatpush1.bf16.msra.mxu0 %v1734_v15 }
 0x13b   :  { %1189 = vmatmul.mubr.f32.vlgmr.msra.gmra.mrb[2].mxu0 %v1910_v34 }
 0x13d   :  { %v622_v17 = vpop.f32.mrb[0].mxu1 }
 0x13e   :  { %v624_v18 = vpop.f32.mrb[1].mxu1 }
 0x166   :  { %v764_v21 = vpop.f32.mrb[0].mxu0 }
 0x167   :  { %v1736_v23 = vadd.f32 %v764_v21, %v622_v17  ;;  %v766_v24 = vpop.f32.mrb[1].mxu0 }
 0x168   :  { %v1737_v25 = vadd.f32 %v766_v24, %v624_v18 }
 0x16a   :  { %v1201_v26 = vcombine.low %v1736_v23, %v1737_v25 }
 0x16c   :  { %1207 = vst [vmem:[#allocation7] sm:$0xff] %v1201_v26 }
 0x1e5   :  { %v977_v27 = vpop.f32.mrb[2].mxu1 }
 0x1e6   :  { %v979_v28 = vpop.f32.mrb[3].mxu1 }
 0x1e7   :  { %v1202_v29 = vcombine.low %v977_v27, %v979_v28 }
 0x1e9   :  { %1208 = vst [vmem:[#allocation7 + $0x8] sm:$0xff] %v1202_v29 }
 0x20e   :  { %v1190_v30 = vpop.f32.mrb[2].mxu0 }
 0x20f   :  { %v1192_v31 = vpop.f32.mrb[3].mxu0 }
 0x210   :  { %v1203_v32 = vcombine.low %v1190_v30, %v1192_v31 }
 0x212   :  { %1212 = vst.msk [vmem:[#allocation7 + $0x10] sm:$0xff] %vm1211_vm3, %v1203_v32 }
 0x213   :  { %1814 = shalt.err (!%p1811_p6)
}
 0x214   :  { %s1815_s10 = scalar_lea.hbm %s1931_s2, 384 }
 0x215   :  { %p1816_p7 = scmp.ne.s32.totalorder %s1931_s2, %s1815_s10  ;;  %p1819_p8 = scmp.lt.u32.totalorder %s1815_s10, %s1931_s2 }
 0x217   :  { %p1821_p9 = pnand %p1819_p8, %p1816_p7 }
 0x219   :  { %1824 = shalt.err (!%p1821_p9)
}
 0x21a   :  { %1222 = dma.vmem_to_hbm [thread:$0]  %s1220_s6, 384, %s1931_s2, [#allocation4]  }
 0x21b   :  { %1829 = dma.done.wait [#allocation4], 384  }
 0x21c   :  { %1830 = vsyncadd [#allocation4], 4294966912 }
 0x21d   :  { %1226 = vsyncpa [#allocation3], 1 }
 0x21e   :  { %1227 = vsyncpa [#allocation6], 1 }
 0x21f   :  { %1228 = vsyncpa [#allocation4], 1 }

</bundles_post_ra>
